<compile_context>
chip_gen: v5e
topology: v5e:2x2
jax: 0.10.0
libtpu: 0.0.40
codegen_flags: <defaults>
</compile_context>

<pallas_src>
import jax
import jax.numpy as jnp
from jax.experimental import pallas as pl
from jax.experimental.pallas import tpu as pltpu

# ---- hyperparameters from KorniaAugmentationPipeline.__init__ ----
S_COLOR, P_COLOR, P_FLIP, P_GRAY, P_BLUR = 0.1, 0.8, 0.5, 0.2, 0.5
KERNEL_MIN, KERNEL_MAX = 0.1, 2.0
RADIUS = KERNEL_MAX * 2
KSIZE = int(RADIUS * 2 + 1)          # 9 -> (9, 9) Gaussian kernel
R = KSIZE // 2                       # 4-pixel reflect border
NFP = 4 + KSIZE                      # floats / sample: bright, contrast, sat, hue, 9 taps

GRAY_W = (0.299, 0.587, 0.114)       # kornia rgb_to_grayscale weights


# ---------------------------- in-kernel helpers ----------------------------
def _rgb_to_hsv(r, g, b):
    maxc = jnp.maximum(jnp.maximum(r, g), b)
    minc = jnp.minimum(jnp.minimum(r, g), b)
    v = maxc
    delta = maxc - minc
    # two EUP approx reciprocals instead of 4 per-pixel divides
    s = delta * pl.reciprocal(maxc + 1e-8, approx=True)
    dsafe = jnp.where(delta == 0.0, 1.0, delta)
    inv_d = pl.reciprocal(dsafe, approx=True)
    rc = (maxc - r) * inv_d
    gc = (maxc - g) * inv_d
    bc = (maxc - b) * inv_d
    h = jnp.where(maxc == r, bc - gc,
        jnp.where(maxc == g, 2.0 + rc - bc, 4.0 + gc - rc))
    h = h * (1.0 / 6.0)
    h = h - jnp.floor(h)
    h = jnp.where(delta == 0.0, 0.0, h)
    return h, s, v


def _hsv_to_rgb(h, s, v):
    # k(n) = (n + 6h) mod 6 ; f(n) = v - v*s*max(0, min(k, 4-k, 1))
    h6 = h * 6.0
    vs = v * s

    def f(n):
        k = n + h6                                  # in [1, 11)
        k = jnp.where(k >= 6.0, k - 6.0, k)         # mod 6
        t = jnp.minimum(jnp.minimum(k, 4.0 - k), 1.0)
        return v - vs * jnp.maximum(t, 0.0)

    return f(5.0), f(3.0), f(1.0)


# --------------------------------- kernel ----------------------------------
def _aug_kernel(flags_ref, x_ref, fpar_ref, o_ref, rev_ref, pad_ref):
    bt, C, H, W = x_ref.shape
    base = pl.program_id(0) * bt

    do_flip  = [flags_ref[4 * (base + i) + 0] > 0 for i in range(bt)]
    do_color = [flags_ref[4 * (base + i) + 1] > 0 for i in range(bt)]
    do_gray  = [flags_ref[4 * (base + i) + 2] > 0 for i in range(bt)]
    do_blur  = [flags_ref[4 * (base + i) + 3] > 0 for i in range(bt)]

    any_flip = do_flip[0]
    for i in range(1, bt):
        any_flip = jnp.logical_or(any_flip, do_flip[i])

    # Build the 0/1 lane-reversal permutation at most once per block; skipped
    # entirely if nobody in the block flips.
    @pl.when(any_flip)
    def _():
        ii = jax.lax.broadcasted_iota(jnp.int32, (W, W), 0)
        jj = jax.lax.broadcasted_iota(jnp.int32, (W, W), 1)
        rev_ref[...] = (ii + jj == W - 1).astype(jnp.float32)

    for i in range(bt):
        pbase = NFP * (base + i)

        # 1) RandomHorizontalFlip(p=p_flip): exact f32 0/1 permutation matmul.
        # TODO(synk): switch to a native lane reversal (lax.rev) once its
        # Mosaic lowering is guaranteed on all three generations.
        @pl.when(do_flip[i])
        def _():
            if H % 8 == 0:   # (3,H,W)->(3H,W) collapse is layout-trivial
                res = jnp.dot(x_ref[i].reshape(C * H, W), rev_ref[...],
                              preferred_element_type=jnp.float32)
                o_ref[i] = res.reshape(C, H, W)
            else:            # rare fallback: per-channel matmuls
                for c in range(C):
                    o_ref[i, c] = jnp.dot(x_ref[i, c], rev_ref[...],
                                          preferred_element_type=jnp.float32)

        @pl.when(jnp.logical_not(do_flip[i]))
        def _():
            o_ref[i] = x_ref[i]

        # 2) ColorJitter(0.8*s, 0.8*s, 0.8*s, 0.2*s) applied with p=p_color.
        # TODO(synk): kornia randomizes the order of the four jitter sub-ops
        # and its adjust_contrast/adjust_hue semantics differ slightly from
        # this torchvision-style (gray blend / fractional-turn hue) version.
        @pl.when(do_color[i])
        def _():
            bright   = fpar_ref[pbase + 0]
            contrast = fpar_ref[pbase + 1]
            satur    = fpar_ref[pbase + 2]
            hue      = fpar_ref[pbase + 3]

            img = o_ref[i]                                           # [3,H,W]
            # brightness
            img = jnp.clip(img * bright, 0.0, 1.0)
            # contrast: blend with the mean grayscale intensity
            gray = GRAY_W[0] * img[0] + GRAY_W[1] * img[1] + GRAY_W[2] * img[2]
            mean_g = jnp.sum(gray) * (1.0 / (H * W))
            img = jnp.clip(contrast * img + (1.0 - contrast) * mean_g, 0.0, 1.0)
            # saturation: blend with grayscale
            gray = GRAY_W[0] * img[0] + GRAY_W[1] * img[1] + GRAY_W[2] * img[2]
            r  = jnp.clip(satur * img[0] + (1.0 - satur) * gray, 0.0, 1.0)
            g  = jnp.clip(satur * img[1] + (1.0 - satur) * gray, 0.0, 1.0)
            bl = jnp.clip(satur * img[2] + (1.0 - satur) * gray, 0.0, 1.0)
            # hue: HSV round trip, hue shift as a fraction of a turn
            h, s, v = _rgb_to_hsv(r, g, bl)
            h = h + hue
            h = h - jnp.floor(h)
            r, g, bl = _hsv_to_rgb(h, s, v)
            o_ref[i, 0] = jnp.clip(r, 0.0, 1.0)
            o_ref[i, 1] = jnp.clip(g, 0.0, 1.0)
            o_ref[i, 2] = jnp.clip(bl, 0.0, 1.0)

        # 3) RandomGrayscale(p=p_gray): one broadcast store (v5e: 1 vst slot).
        @pl.when(do_gray[i])
        def _():
            img = o_ref[i]
            gray = GRAY_W[0] * img[0] + GRAY_W[1] * img[1] + GRAY_W[2] * img[2]
            o_ref[i] = jnp.broadcast_to(gray[None, :, :], (C, H, W))

        # 4) GaussianBlur((9,9), sigma~U(kernel_min,kernel_max), p=p_blur):
        #    separable 9-tap accumulate from a reflect-padded VMEM scratch
        #    (no concatenates / per-tap shifted full-image temporaries).
        @pl.when(do_blur[i])
        def _():
            w = [fpar_ref[pbase + 4 + t] for t in range(KSIZE)]
            img = o_ref[i]                                           # [3,H,W]

            # vertical pass: reflect-pad rows into pad_ref[:, :, :W]
            pad_ref[:, R:R + H, 0:W] = img
            for k in range(R):
                pad_ref[:, k:k + 1, 0:W] = img[:, R - k:R - k + 1, :]
                pad_ref[:, R + H + k:R + H + k + 1, 0:W] = \
                    img[:, H - 2 - k:H - 1 - k, :]
            acc = w[0] * pad_ref[:, 0:H, 0:W]
            for t in range(1, KSIZE):
                acc = acc + w[t] * pad_ref[:, t:t + H, 0:W]

            # horizontal pass: reflect-pad cols into pad_ref[:, :H, :]
            pad_ref[:, 0:H, R:R + W] = acc
            for k in range(R):
                pad_ref[:, 0:H, k:k + 1] = acc[:, :, R - k:R - k + 1]
                pad_ref[:, 0:H, R + W + k:R + W + k + 1] = \
                    acc[:, :, W - 2 - k:W - 1 - k]
            out = w[0] * pad_ref[:, 0:H, 0:W]
            for t in range(1, KSIZE):
                out = out + w[t] * pad_ref[:, 0:H, t:t + W]
            o_ref[i] = out                                           # one store


# ------------------------------ glue / wrapper ------------------------------
def _sample_params(key, batch):
    k = jax.random.split(key, 9)
    flip  = jax.random.bernoulli(k[0], P_FLIP,  (batch,))
    color = jax.random.bernoulli(k[1], P_COLOR, (batch,))
    gray  = jax.random.bernoulli(k[2], P_GRAY,  (batch,))
    blur  = jax.random.bernoulli(k[3], P_BLUR,  (batch,))
    flags = jnp.stack([flip, color, gray, blur], axis=1).astype(jnp.int32).reshape(-1)

    bb = cc = ss = 0.8 * S_COLOR
    hh = 0.2 * S_COLOR
    bright = jax.random.uniform(k[4], (batch,), minval=1.0 - bb, maxval=1.0 + bb)
    contr  = jax.random.uniform(k[5], (batch,), minval=1.0 - cc, maxval=1.0 + cc)
    satur  = jax.random.uniform(k[6], (batch,), minval=1.0 - ss, maxval=1.0 + ss)
    hue    = jax.random.uniform(k[7], (batch,), minval=-hh, maxval=hh)
    sigma  = jax.random.uniform(k[8], (batch,), minval=KERNEL_MIN, maxval=KERNEL_MAX)

    taps = jnp.arange(KSIZE, dtype=jnp.float32) - (KSIZE - 1) / 2          # [-4..4]
    k1d = jnp.exp(-0.5 * (taps[None, :] / sigma[:, None]) ** 2)            # [B, 9]
    k1d = k1d / jnp.sum(k1d, axis=-1, keepdims=True)

    fpar = jnp.concatenate(
        [jnp.stack([bright, contr, satur, hue], axis=1), k1d], axis=1)     # [B, 13]
    return flags, fpar.astype(jnp.float32).reshape(-1)


def _pick_block_batch(batch, c, h, w, target_bytes=2 << 20, max_bt=8):
    """Images per grid step: big enough to beat ~0.35us/step overhead,
    small enough for VMEM, a divisor of B, and keep >=2 grid steps when
    possible so both v7x TensorCores get work."""
    per_img = c * h * w * 4
    want = int(max(1, min(max_bt, target_bytes // max(per_img, 1))))
    divs = [d for d in range(1, batch + 1) if batch % d == 0 and d <= want]
    pref = [d for d in divs if batch // d >= 2]
    return max(pref) if pref else max(divs)


def _vmem_limit_bytes():
    # ~75% of physical VMEM: ~48 MiB on v7x (64 MiB/TC), ~96 MiB on v5e/v6e.
    try:
        cap = int(pltpu.get_tpu_info().vmem_capacity_bytes)
    except Exception:
        cap = 64 * 1024 * 1024
    return (cap * 3) // 4


def kornia_augmentation_pipeline(x, key, block_batch=None):
    B, C, H, W = x.shape
    assert C == 3, "RGB input required"
    assert H > R and W > R, "image must be larger than the blur radius"
    flags, fpar = _sample_params(key, B)

    bt = _pick_block_batch(B, C, H, W) if block_batch is None else block_batch
    assert B % bt == 0

    grid_spec = pltpu.PrefetchScalarGridSpec(
        num_scalar_prefetch=1,                                   # int32 flags
        grid=(B // bt,),
        in_specs=[
            pl.BlockSpec((bt, C, H, W), lambda b, flags: (b, 0, 0, 0)),   # images
            pl.BlockSpec(memory_space=pltpu.MemorySpace.SMEM),            # fpar [B*13]
        ],
        out_specs=pl.BlockSpec((bt, C, H, W), lambda b, flags: (b, 0, 0, 0)),
        scratch_shapes=[
            pltpu.VMEM((W, W), jnp.float32),                     # flip permutation
            pltpu.VMEM((C, H + 2 * R, W + 2 * R), jnp.float32),  # blur reflect pad
        ],
    )
    # TODO(synk): for very large images add an H-tile grid axis with a 4-row
    # halo (and a two-pass contrast mean) so blocks stay inside VMEM on v7x.
    # TODO(synk): accept uint8/bf16 I/O (cast in-kernel) to cut HBM traffic
    # when the caller does not need f32 round-tripping / buffer donation.
    # TODO(synk): a lane-dense (W padded to 128) layout would turn masked
    # stores into full vst for odd widths; skipped to keep reflect borders exact.
    return pl.pallas_call(
        _aug_kernel,
        out_shape=jax.ShapeDtypeStruct((B, C, H, W), jnp.float32),
        grid_spec=grid_spec,
        input_output_aliases={1: 0},                             # donate image buffer
        compiler_params=pltpu.CompilerParams(
            dimension_semantics=("parallel",),
            vmem_limit_bytes=_vmem_limit_bytes()),
    )(flags, x.astype(jnp.float32), fpar)


if __name__ == "__main__":
    key = jax.random.PRNGKey(0)
    k_img, k_aug = jax.random.split(key)
    B, C, H, W = 2, 3, 16, 16
    x = jax.random.uniform(k_img, (B, C, H, W), dtype=jnp.float32)  # images in [0,1]

    out = kornia_augmentation_pipeline(x, k_aug)
    out = jax.block_until_ready(out)

    assert out.shape == (B, C, H, W)
    assert bool(jnp.all(jnp.isfinite(out)))
    print("KERNEL_OK")
</pallas_src>

<mosaic_0001>
module attributes {stable_mosaic.version = 11 : i64} {
  func.func @_aug_kernel(%arg0: i32, %arg1: memref<8xi32, #tpu.memory_space<smem>>, %arg2: memref<1x3x16x16xf32, #tpu.memory_space<vmem>>, %arg3: memref<26xf32, #tpu.memory_space<smem>>, %arg4: memref<1x3x16x16xf32, #tpu.memory_space<vmem>>, %arg5: memref<16x16xf32, #tpu.memory_space<vmem>>, %arg6: memref<3x24x24xf32, #tpu.memory_space<vmem>>) attributes {dimension_semantics = [#tpu.dimension_semantics<parallel>], iteration_bounds = array<i64: 2>, scalar_prefetch = 1 : i64, scratch_operands = 2 : i64, tpu.core_type = #tpu.core_type<tc>, window_params = [{transform_indices = @transform_0, window_bounds = array<i64: 1, 3, 16, 16>}, {transform_indices = @transform_1, window_bounds = array<i64: 26>}, {transform_indices = @transform_2, window_bounds = array<i64: 1, 3, 16, 16>}]} {
    %c1_i32 = arith.constant 1 : i32
    %0 = arith.muli %arg0, %c1_i32 : i32
    %c0_i32 = arith.constant 0 : i32
    %1 = arith.addi %0, %c0_i32 : i32
    %c4_i32 = arith.constant 4 : i32
    %2 = arith.muli %c4_i32, %1 : i32
    %c0_i32_0 = arith.constant 0 : i32
    %3 = arith.addi %2, %c0_i32_0 : i32
    %4 = arith.index_cast %3 : i32 to index
    %5 = memref.load %arg1[%4] : memref<8xi32, #tpu.memory_space<smem>>
    %c0_i32_1 = arith.constant 0 : i32
    %6 = arith.cmpi sgt, %5, %c0_i32_1 : i32
    %c0_i32_2 = arith.constant 0 : i32
    %7 = arith.addi %0, %c0_i32_2 : i32
    %c4_i32_3 = arith.constant 4 : i32
    %8 = arith.muli %c4_i32_3, %7 : i32
    %c1_i32_4 = arith.constant 1 : i32
    %9 = arith.addi %8, %c1_i32_4 : i32
    %10 = arith.index_cast %9 : i32 to index
    %11 = memref.load %arg1[%10] : memref<8xi32, #tpu.memory_space<smem>>
    %c0_i32_5 = arith.constant 0 : i32
    %12 = arith.cmpi sgt, %11, %c0_i32_5 : i32
    %c0_i32_6 = arith.constant 0 : i32
    %13 = arith.addi %0, %c0_i32_6 : i32
    %c4_i32_7 = arith.constant 4 : i32
    %14 = arith.muli %c4_i32_7, %13 : i32
    %c2_i32 = arith.constant 2 : i32
    %15 = arith.addi %14, %c2_i32 : i32
    %16 = arith.index_cast %15 : i32 to index
    %17 = memref.load %arg1[%16] : memref<8xi32, #tpu.memory_space<smem>>
    %c0_i32_8 = arith.constant 0 : i32
    %18 = arith.cmpi sgt, %17, %c0_i32_8 : i32
    %c0_i32_9 = arith.constant 0 : i32
    %19 = arith.addi %0, %c0_i32_9 : i32
    %c4_i32_10 = arith.constant 4 : i32
    %20 = arith.muli %c4_i32_10, %19 : i32
    %c3_i32 = arith.constant 3 : i32
    %21 = arith.addi %20, %c3_i32 : i32
    %22 = arith.index_cast %21 : i32 to index
    %23 = memref.load %arg1[%22] : memref<8xi32, #tpu.memory_space<smem>>
    %c0_i32_11 = arith.constant 0 : i32
    %24 = arith.cmpi sgt, %23, %c0_i32_11 : i32
    %25 = arith.extui %6 : i1 to i32
    %c0_i32_12 = arith.constant 0 : i32
    %26 = arith.cmpi ne, %25, %c0_i32_12 : i32
    scf.if %26 {
      %40 = tpu.iota {dimensions = array<i32: 0>} : vector<16x16xi32>
      %41 = tpu.iota {dimensions = array<i32: 1>} : vector<16x16xi32>
      %42 = arith.addi %40, %41 : vector<16x16xi32>
      %c15_i32 = arith.constant 15 : i32
      %43 = vector.broadcast %c15_i32 : i32 to vector<16x16xi32>
      %44 = arith.cmpi eq, %42, %43 : vector<16x16xi32>
      %45 = arith.extui %44 : vector<16x16xi1> to vector<16x16xi32>
      %46 = arith.sitofp %45 : vector<16x16xi32> to vector<16x16xf32>
      %c0 = arith.constant 0 : index
      %c0_19 = arith.constant 0 : index
      %47 = vector.load %arg5[%c0, %c0_19] : memref<16x16xf32, #tpu.memory_space<vmem>>, vector<16x16xf32>
      tpu.vector_store %arg5[%c0, %c0_19], %46 {strides = array<i32>} : memref<16x16xf32, #tpu.memory_space<vmem>>, vector<16x16xf32>,
    } else {
    }
    %c0_i32_13 = arith.constant 0 : i32
    %27 = arith.addi %0, %c0_i32_13 : i32
    %c13_i32 = arith.constant 13 : i32
    %28 = arith.muli %c13_i32, %27 : i32
    %29 = arith.extui %6 : i1 to i32
    %c0_i32_14 = arith.constant 0 : i32
    %30 = arith.cmpi ne, %29, %c0_i32_14 : i32
    scf.if %30 {
      %c0 = arith.constant 0 : index
      %c0_19 = arith.constant 0 : index
      %c0_20 = arith.constant 0 : index
      %c0_21 = arith.constant 0 : index
      %40 = vector.load %arg2[%c0, %c0_19, %c0_20, %c0_21] : memref<1x3x16x16xf32, #tpu.memory_space<vmem>>, vector<1x3x16x16xf32>
      %41 = vector.shape_cast %40 : vector<1x3x16x16xf32> to vector<3x16x16xf32>
      %42 = vector.shape_cast %41 : vector<3x16x16xf32> to vector<48x16xf32>
      %c0_22 = arith.constant 0 : index
      %c0_23 = arith.constant 0 : index
      %43 = vector.load %arg5[%c0_22, %c0_23] : memref<16x16xf32, #tpu.memory_space<vmem>>, vector<16x16xf32>
      %cst = arith.constant dense<0.000000e+00> : vector<48x16xf32>
      %44 = tpu.matmul %42, %43, %cst {dimension_numbers = #tpu.dot_dimension_numbers<[1], [0], [0], [1], [0, 0, 1, 1], [], []>} : vector<48x16xf32>, vector<16x16xf32>, vector<48x16xf32> -> vector<48x16xf32>
      %45 = vector.shape_cast %44 : vector<48x16xf32> to vector<3x16x16xf32>
      %c0_24 = arith.constant 0 : index
      %c0_25 = arith.constant 0 : index
      %c0_26 = arith.constant 0 : index
      %c0_27 = arith.constant 0 : index
      %46 = vector.load %arg4[%c0_24, %c0_25, %c0_26, %c0_27] : memref<1x3x16x16xf32, #tpu.memory_space<vmem>>, vector<1x3x16x16xf32>
      %47 = vector.shape_cast %46 : vector<1x3x16x16xf32> to vector<3x16x16xf32>
      %48 = vector.shape_cast %45 : vector<3x16x16xf32> to vector<1x3x16x16xf32>
      tpu.vector_store %arg4[%c0_24, %c0_25, %c0_26, %c0_27], %48 {strides = array<i32>} : memref<1x3x16x16xf32, #tpu.memory_space<vmem>>, vector<1x3x16x16xf32>,
    } else {
    }
    %true = arith.constant true
    %31 = arith.xori %6, %true : i1
    %32 = arith.extui %31 : i1 to i32
    %c0_i32_15 = arith.constant 0 : i32
    %33 = arith.cmpi ne, %32, %c0_i32_15 : i32
    scf.if %33 {
      %c0 = arith.constant 0 : index
      %c0_19 = arith.constant 0 : index
      %c0_20 = arith.constant 0 : index
      %c0_21 = arith.constant 0 : index
      %40 = vector.load %arg2[%c0, %c0_19, %c0_20, %c0_21] : memref<1x3x16x16xf32, #tpu.memory_space<vmem>>, vector<1x3x16x16xf32>
      %41 = vector.shape_cast %40 : vector<1x3x16x16xf32> to vector<3x16x16xf32>
      %c0_22 = arith.constant 0 : index
      %c0_23 = arith.constant 0 : index
      %c0_24 = arith.constant 0 : index
      %c0_25 = arith.constant 0 : index
      %42 = vector.load %arg4[%c0_22, %c0_23, %c0_24, %c0_25] : memref<1x3x16x16xf32, #tpu.memory_space<vmem>>, vector<1x3x16x16xf32>
      %43 = vector.shape_cast %42 : vector<1x3x16x16xf32> to vector<3x16x16xf32>
      %44 = vector.shape_cast %41 : vector<3x16x16xf32> to vector<1x3x16x16xf32>
      tpu.vector_store %arg4[%c0_22, %c0_23, %c0_24, %c0_25], %44 {strides = array<i32>} : memref<1x3x16x16xf32, #tpu.memory_space<vmem>>, vector<1x3x16x16xf32>,
    } else {
    }
    %34 = arith.extui %12 : i1 to i32
    %c0_i32_16 = arith.constant 0 : i32
    %35 = arith.cmpi ne, %34, %c0_i32_16 : i32
    scf.if %35 {
      %c0_i32_19 = arith.constant 0 : i32
      %40 = arith.addi %28, %c0_i32_19 : i32
      %41 = arith.index_cast %40 : i32 to index
      %42 = memref.load %arg3[%41] : memref<26xf32, #tpu.memory_space<smem>>
      %c1_i32_20 = arith.constant 1 : i32
      %43 = arith.addi %28, %c1_i32_20 : i32
      %44 = arith.index_cast %43 : i32 to index
      %45 = memref.load %arg3[%44] : memref<26xf32, #tpu.memory_space<smem>>
      %c2_i32_21 = arith.constant 2 : i32
      %46 = arith.addi %28, %c2_i32_21 : i32
      %47 = arith.index_cast %46 : i32 to index
      %48 = memref.load %arg3[%47] : memref<26xf32, #tpu.memory_space<smem>>
      %c3_i32_22 = arith.constant 3 : i32
      %49 = arith.addi %28, %c3_i32_22 : i32
      %50 = arith.index_cast %49 : i32 to index
      %51 = memref.load %arg3[%50] : memref<26xf32, #tpu.memory_space<smem>>
      %c0 = arith.constant 0 : index
      %c0_23 = arith.constant 0 : index
      %c0_24 = arith.constant 0 : index
      %c0_25 = arith.constant 0 : index
      %52 = vector.load %arg4[%c0, %c0_23, %c0_24, %c0_25] : memref<1x3x16x16xf32, #tpu.memory_space<vmem>>, vector<1x3x16x16xf32>
      %53 = vector.shape_cast %52 : vector<1x3x16x16xf32> to vector<3x16x16xf32>
      %54 = vector.broadcast %42 : f32 to vector<3x16x16xf32>
      %55 = arith.mulf %53, %54 : vector<3x16x16xf32>
      %cst = arith.constant 0.000000e+00 : f32
      %cst_26 = arith.constant 1.000000e+00 : f32
      %56 = vector.broadcast %cst : f32 to vector<3x16x16xf32>
      %57 = arith.maximumf %56, %55 : vector<3x16x16xf32>
      %58 = vector.broadcast %cst_26 : f32 to vector<3x16x16xf32>
      %59 = arith.minimumf %58, %57 : vector<3x16x16xf32>
      %60 = vector.extract_strided_slice %59 {offsets = [0, 0, 0], sizes = [1, 16, 16], strides = [1, 1, 1]} : vector<3x16x16xf32> to vector<1x16x16xf32>
      %61 = vector.shape_cast %60 : vector<1x16x16xf32> to vector<16x16xf32>
      %cst_27 = arith.constant 2.990000e-01 : f32
      %62 = vector.broadcast %cst_27 : f32 to vector<16x16xf32>
      %63 = arith.mulf %62, %61 : vector<16x16xf32>
      %64 = vector.extract_strided_slice %59 {offsets = [1, 0, 0], sizes = [1, 16, 16], strides = [1, 1, 1]} : vector<3x16x16xf32> to vector<1x16x16xf32>
      %65 = vector.shape_cast %64 : vector<1x16x16xf32> to vector<16x16xf32>
      %cst_28 = arith.constant 5.870000e-01 : f32
      %66 = vector.broadcast %cst_28 : f32 to vector<16x16xf32>
      %67 = arith.mulf %66, %65 : vector<16x16xf32>
      %68 = arith.addf %63, %67 : vector<16x16xf32>
      %69 = vector.extract_strided_slice %59 {offsets = [2, 0, 0], sizes = [1, 16, 16], strides = [1, 1, 1]} : vector<3x16x16xf32> to vector<1x16x16xf32>
      %70 = vector.shape_cast %69 : vector<1x16x16xf32> to vector<16x16xf32>
      %cst_29 = arith.constant 1.140000e-01 : f32
      %71 = vector.broadcast %cst_29 : f32 to vector<16x16xf32>
      %72 = arith.mulf %71, %70 : vector<16x16xf32>
      %73 = arith.addf %68, %72 : vector<16x16xf32>
      %74 = vector.shape_cast %73 : vector<16x16xf32> to vector<1x16x16xf32>
      %cst_30 = arith.constant dense<0.000000e+00> : vector<1xf32>
      %75 = vector.multi_reduction <add>, %74, %cst_30 [1, 2] : vector<1x16x16xf32> to vector<1xf32>
      %76 = vector.shape_cast %75 : vector<1xf32> to vector<1x1x1xf32>
      %77 = vector.extract %76[0, 0, 0] : f32 from vector<1x1x1xf32>
      %cst_31 = arith.constant 3.906250e-03 : f32
      %78 = arith.mulf %77, %cst_31 : f32
      %79 = vector.broadcast %45 : f32 to vector<3x16x16xf32>
      %80 = arith.mulf %79, %59 : vector<3x16x16xf32>
      %cst_32 = arith.constant 1.000000e+00 : f32
      %81 = arith.subf %cst_32, %45 : f32
      %82 = arith.mulf %81, %78 : f32
      %83 = vector.broadcast %82 : f32 to vector<3x16x16xf32>
      %84 = arith.addf %80, %83 : vector<3x16x16xf32>
      %cst_33 = arith.constant 0.000000e+00 : f32
      %cst_34 = arith.constant 1.000000e+00 : f32
      %85 = vector.broadcast %cst_33 : f32 to vector<3x16x16xf32>
      %86 = arith.maximumf %85, %84 : vector<3x16x16xf32>
      %87 = vector.broadcast %cst_34 : f32 to vector<3x16x16xf32>
      %88 = arith.minimumf %87, %86 : vector<3x16x16xf32>
      %89 = vector.extract_strided_slice %88 {offsets = [0, 0, 0], sizes = [1, 16, 16], strides = [1, 1, 1]} : vector<3x16x16xf32> to vector<1x16x16xf32>
      %90 = vector.shape_cast %89 : vector<1x16x16xf32> to vector<16x16xf32>
      %cst_35 = arith.constant 2.990000e-01 : f32
      %91 = vector.broadcast %cst_35 : f32 to vector<16x16xf32>
      %92 = arith.mulf %91, %90 : vector<16x16xf32>
      %93 = vector.extract_strided_slice %88 {offsets = [1, 0, 0], sizes = [1, 16, 16], strides = [1, 1, 1]} : vector<3x16x16xf32> to vector<1x16x16xf32>
      %94 = vector.shape_cast %93 : vector<1x16x16xf32> to vector<16x16xf32>
      %cst_36 = arith.constant 5.870000e-01 : f32
      %95 = vector.broadcast %cst_36 : f32 to vector<16x16xf32>
      %96 = arith.mulf %95, %94 : vector<16x16xf32>
      %97 = arith.addf %92, %96 : vector<16x16xf32>
      %98 = vector.extract_strided_slice %88 {offsets = [2, 0, 0], sizes = [1, 16, 16], strides = [1, 1, 1]} : vector<3x16x16xf32> to vector<1x16x16xf32>
      %99 = vector.shape_cast %98 : vector<1x16x16xf32> to vector<16x16xf32>
      %cst_37 = arith.constant 1.140000e-01 : f32
      %100 = vector.broadcast %cst_37 : f32 to vector<16x16xf32>
      %101 = arith.mulf %100, %99 : vector<16x16xf32>
      %102 = arith.addf %97, %101 : vector<16x16xf32>
      %103 = vector.extract_strided_slice %88 {offsets = [0, 0, 0], sizes = [1, 16, 16], strides = [1, 1, 1]} : vector<3x16x16xf32> to vector<1x16x16xf32>
      %104 = vector.shape_cast %103 : vector<1x16x16xf32> to vector<16x16xf32>
      %105 = vector.broadcast %48 : f32 to vector<16x16xf32>
      %106 = arith.mulf %105, %104 : vector<16x16xf32>
      %cst_38 = arith.constant 1.000000e+00 : f32
      %107 = arith.subf %cst_38, %48 : f32
      %108 = vector.broadcast %107 : f32 to vector<16x16xf32>
      %109 = arith.mulf %108, %102 : vector<16x16xf32>
      %110 = arith.addf %106, %109 : vector<16x16xf32>
      %cst_39 = arith.constant 0.000000e+00 : f32
      %cst_40 = arith.constant 1.000000e+00 : f32
      %111 = vector.broadcast %cst_39 : f32 to vector<16x16xf32>
      %112 = arith.maximumf %111, %110 : vector<16x16xf32>
      %113 = vector.broadcast %cst_40 : f32 to vector<16x16xf32>
      %114 = arith.minimumf %113, %112 : vector<16x16xf32>
      %115 = vector.extract_strided_slice %88 {offsets = [1, 0, 0], sizes = [1, 16, 16], strides = [1, 1, 1]} : vector<3x16x16xf32> to vector<1x16x16xf32>
      %116 = vector.shape_cast %115 : vector<1x16x16xf32> to vector<16x16xf32>
      %117 = vector.broadcast %48 : f32 to vector<16x16xf32>
      %118 = arith.mulf %117, %116 : vector<16x16xf32>
      %cst_41 = arith.constant 1.000000e+00 : f32
      %119 = arith.subf %cst_41, %48 : f32
      %120 = vector.broadcast %119 : f32 to vector<16x16xf32>
      %121 = arith.mulf %120, %102 : vector<16x16xf32>
      %122 = arith.addf %118, %121 : vector<16x16xf32>
      %cst_42 = arith.constant 0.000000e+00 : f32
      %cst_43 = arith.constant 1.000000e+00 : f32
      %123 = vector.broadcast %cst_42 : f32 to vector<16x16xf32>
      %124 = arith.maximumf %123, %122 : vector<16x16xf32>
      %125 = vector.broadcast %cst_43 : f32 to vector<16x16xf32>
      %126 = arith.minimumf %125, %124 : vector<16x16xf32>
      %127 = vector.extract_strided_slice %88 {offsets = [2, 0, 0], sizes = [1, 16, 16], strides = [1, 1, 1]} : vector<3x16x16xf32> to vector<1x16x16xf32>
      %128 = vector.shape_cast %127 : vector<1x16x16xf32> to vector<16x16xf32>
      %129 = vector.broadcast %48 : f32 to vector<16x16xf32>
      %130 = arith.mulf %129, %128 : vector<16x16xf32>
      %cst_44 = arith.constant 1.000000e+00 : f32
      %131 = arith.subf %cst_44, %48 : f32
      %132 = vector.broadcast %131 : f32 to vector<16x16xf32>
      %133 = arith.mulf %132, %102 : vector<16x16xf32>
      %134 = arith.addf %130, %133 : vector<16x16xf32>
      %cst_45 = arith.constant 0.000000e+00 : f32
      %cst_46 = arith.constant 1.000000e+00 : f32
      %135 = vector.broadcast %cst_45 : f32 to vector<16x16xf32>
      %136 = arith.maximumf %135, %134 : vector<16x16xf32>
      %137 = vector.broadcast %cst_46 : f32 to vector<16x16xf32>
      %138 = arith.minimumf %137, %136 : vector<16x16xf32>
      %139 = arith.maximumf %114, %126 : vector<16x16xf32>
      %140 = arith.maximumf %139, %138 : vector<16x16xf32>
      %141 = arith.minimumf %114, %126 : vector<16x16xf32>
      %142 = arith.minimumf %141, %138 : vector<16x16xf32>
      %143 = arith.subf %140, %142 : vector<16x16xf32>
      %cst_47 = arith.constant 9.99999993E-9 : f32
      %144 = vector.broadcast %cst_47 : f32 to vector<16x16xf32>
      %145 = arith.addf %140, %144 : vector<16x16xf32>
      %146 = tpu.reciprocal %145 {approx = true} : vector<16x16xf32> -> vector<16x16xf32>
      %147 = arith.mulf %143, %146 : vector<16x16xf32>
      %cst_48 = arith.constant 0.000000e+00 : f32
      %148 = vector.broadcast %cst_48 : f32 to vector<16x16xf32>
      %149 = arith.cmpf oeq, %143, %148 : vector<16x16xf32>
      %cst_49 = arith.constant 1.000000e+00 : f32
      %150 = vector.broadcast %cst_49 : f32 to vector<16x16xf32>
      %151 = arith.select %149, %150, %143 : vector<16x16xi1>, vector<16x16xf32>
      %152 = tpu.reciprocal %151 {approx = true} : vector<16x16xf32> -> vector<16x16xf32>
      %153 = arith.subf %140, %114 : vector<16x16xf32>
      %154 = arith.mulf %153, %152 : vector<16x16xf32>
      %155 = arith.subf %140, %126 : vector<16x16xf32>
      %156 = arith.mulf %155, %152 : vector<16x16xf32>
      %157 = arith.subf %140, %138 : vector<16x16xf32>
      %158 = arith.mulf %157, %152 : vector<16x16xf32>
      %159 = arith.cmpf oeq, %140, %114 : vector<16x16xf32>
      %160 = arith.subf %158, %156 : vector<16x16xf32>
      %161 = arith.cmpf oeq, %140, %126 : vector<16x16xf32>
      %cst_50 = arith.constant 2.000000e+00 : f32
      %162 = vector.broadcast %cst_50 : f32 to vector<16x16xf32>
      %163 = arith.addf %162, %154 : vector<16x16xf32>
      %164 = arith.subf %163, %158 : vector<16x16xf32>
      %cst_51 = arith.constant 4.000000e+00 : f32
      %165 = vector.broadcast %cst_51 : f32 to vector<16x16xf32>
      %166 = arith.addf %165, %156 : vector<16x16xf32>
      %167 = arith.subf %166, %154 : vector<16x16xf32>
      %168 = arith.select %161, %164, %167 : vector<16x16xi1>, vector<16x16xf32>
      %169 = arith.select %159, %160, %168 : vector<16x16xi1>, vector<16x16xf32>
      %cst_52 = arith.constant 0.166666672 : f32
      %170 = vector.broadcast %cst_52 : f32 to vector<16x16xf32>
      %171 = arith.mulf %169, %170 : vector<16x16xf32>
      %172 = math.floor %171 : vector<16x16xf32>
      %173 = arith.subf %171, %172 : vector<16x16xf32>
      %cst_53 = arith.constant 0.000000e+00 : f32
      %174 = vector.broadcast %cst_53 : f32 to vector<16x16xf32>
      %175 = arith.cmpf oeq, %143, %174 : vector<16x16xf32>
      %cst_54 = arith.constant 0.000000e+00 : f32
      %176 = vector.broadcast %cst_54 : f32 to vector<16x16xf32>
      %177 = arith.select %175, %176, %173 : vector<16x16xi1>, vector<16x16xf32>
      %178 = vector.broadcast %51 : f32 to vector<16x16xf32>
      %179 = arith.addf %177, %178 : vector<16x16xf32>
      %180 = math.floor %179 : vector<16x16xf32>
      %181 = arith.subf %179, %180 : vector<16x16xf32>
      %cst_55 = arith.constant 6.000000e+00 : f32
      %182 = vector.broadcast %cst_55 : f32 to vector<16x16xf32>
      %183 = arith.mulf %181, %182 : vector<16x16xf32>
      %184 = arith.mulf %140, %147 : vector<16x16xf32>
      %cst_56 = arith.constant 5.000000e+00 : f32
      %185 = vector.broadcast %cst_56 : f32 to vector<16x16xf32>
      %186 = arith.addf %185, %183 : vector<16x16xf32>
      %cst_57 = arith.constant 6.000000e+00 : f32
      %187 = vector.broadcast %cst_57 : f32 to vector<16x16xf32>
      %188 = arith.cmpf oge, %186, %187 : vector<16x16xf32>
      %cst_58 = arith.constant 6.000000e+00 : f32
      %189 = vector.broadcast %cst_58 : f32 to vector<16x16xf32>
      %190 = arith.subf %186, %189 : vector<16x16xf32>
      %191 = arith.select %188, %190, %186 : vector<16x16xi1>, vector<16x16xf32>
      %cst_59 = arith.constant 4.000000e+00 : f32
      %192 = vector.broadcast %cst_59 : f32 to vector<16x16xf32>
      %193 = arith.subf %192, %191 : vector<16x16xf32>
      %194 = arith.minimumf %191, %193 : vector<16x16xf32>
      %cst_60 = arith.constant 1.000000e+00 : f32
      %195 = vector.broadcast %cst_60 : f32 to vector<16x16xf32>
      %196 = arith.minimumf %194, %195 : vector<16x16xf32>
      %cst_61 = arith.constant 0.000000e+00 : f32
      %197 = vector.broadcast %cst_61 : f32 to vector<16x16xf32>
      %198 = arith.maximumf %196, %197 : vector<16x16xf32>
      %199 = arith.mulf %184, %198 : vector<16x16xf32>
      %200 = arith.subf %140, %199 : vector<16x16xf32>
      %cst_62 = arith.constant 3.000000e+00 : f32
      %201 = vector.broadcast %cst_62 : f32 to vector<16x16xf32>
      %202 = arith.addf %201, %183 : vector<16x16xf32>
      %cst_63 = arith.constant 6.000000e+00 : f32
      %203 = vector.broadcast %cst_63 : f32 to vector<16x16xf32>
      %204 = arith.cmpf oge, %202, %203 : vector<16x16xf32>
      %cst_64 = arith.constant 6.000000e+00 : f32
      %205 = vector.broadcast %cst_64 : f32 to vector<16x16xf32>
      %206 = arith.subf %202, %205 : vector<16x16xf32>
      %207 = arith.select %204, %206, %202 : vector<16x16xi1>, vector<16x16xf32>
      %cst_65 = arith.constant 4.000000e+00 : f32
      %208 = vector.broadcast %cst_65 : f32 to vector<16x16xf32>
      %209 = arith.subf %208, %207 : vector<16x16xf32>
      %210 = arith.minimumf %207, %209 : vector<16x16xf32>
      %cst_66 = arith.constant 1.000000e+00 : f32
      %211 = vector.broadcast %cst_66 : f32 to vector<16x16xf32>
      %212 = arith.minimumf %210, %211 : vector<16x16xf32>
      %cst_67 = arith.constant 0.000000e+00 : f32
      %213 = vector.broadcast %cst_67 : f32 to vector<16x16xf32>
      %214 = arith.maximumf %212, %213 : vector<16x16xf32>
      %215 = arith.mulf %184, %214 : vector<16x16xf32>
      %216 = arith.subf %140, %215 : vector<16x16xf32>
      %cst_68 = arith.constant 1.000000e+00 : f32
      %217 = vector.broadcast %cst_68 : f32 to vector<16x16xf32>
      %218 = arith.addf %217, %183 : vector<16x16xf32>
      %cst_69 = arith.constant 6.000000e+00 : f32
      %219 = vector.broadcast %cst_69 : f32 to vector<16x16xf32>
      %220 = arith.cmpf oge, %218, %219 : vector<16x16xf32>
      %cst_70 = arith.constant 6.000000e+00 : f32
      %221 = vector.broadcast %cst_70 : f32 to vector<16x16xf32>
      %222 = arith.subf %218, %221 : vector<16x16xf32>
      %223 = arith.select %220, %222, %218 : vector<16x16xi1>, vector<16x16xf32>
      %cst_71 = arith.constant 4.000000e+00 : f32
      %224 = vector.broadcast %cst_71 : f32 to vector<16x16xf32>
      %225 = arith.subf %224, %223 : vector<16x16xf32>
      %226 = arith.minimumf %223, %225 : vector<16x16xf32>
      %cst_72 = arith.constant 1.000000e+00 : f32
      %227 = vector.broadcast %cst_72 : f32 to vector<16x16xf32>
      %228 = arith.minimumf %226, %227 : vector<16x16xf32>
      %cst_73 = arith.constant 0.000000e+00 : f32
      %229 = vector.broadcast %cst_73 : f32 to vector<16x16xf32>
      %230 = arith.maximumf %228, %229 : vector<16x16xf32>
      %231 = arith.mulf %184, %230 : vector<16x16xf32>
      %232 = arith.subf %140, %231 : vector<16x16xf32>
      %cst_74 = arith.constant 0.000000e+00 : f32
      %cst_75 = arith.constant 1.000000e+00 : f32
      %233 = vector.broadcast %cst_74 : f32 to vector<16x16xf32>
      %234 = arith.maximumf %233, %200 : vector<16x16xf32>
      %235 = vector.broadcast %cst_75 : f32 to vector<16x16xf32>
      %236 = arith.minimumf %235, %234 : vector<16x16xf32>
      %c0_76 = arith.constant 0 : index
      %c0_77 = arith.constant 0 : index
      %c0_78 = arith.constant 0 : index
      %c0_79 = arith.constant 0 : index
      %237 = vector.load %arg4[%c0_76, %c0_77, %c0_78, %c0_79] : memref<1x3x16x16xf32, #tpu.memory_space<vmem>>, vector<1x1x16x16xf32>
      %238 = vector.shape_cast %237 : vector<1x1x16x16xf32> to vector<16x16xf32>
      %239 = vector.shape_cast %236 : vector<16x16xf32> to vector<1x1x16x16xf32>
      tpu.vector_store %arg4[%c0_76, %c0_77, %c0_78, %c0_79], %239 {strides = array<i32>} : memref<1x3x16x16xf32, #tpu.memory_space<vmem>>, vector<1x1x16x16xf32>,
      %cst_80 = arith.constant 0.000000e+00 : f32
      %cst_81 = arith.constant 1.000000e+00 : f32
      %240 = vector.broadcast %cst_80 : f32 to vector<16x16xf32>
      %241 = arith.maximumf %240, %216 : vector<16x16xf32>
      %242 = vector.broadcast %cst_81 : f32 to vector<16x16xf32>
      %243 = arith.minimumf %242, %241 : vector<16x16xf32>
      %c0_82 = arith.constant 0 : index
      %c1 = arith.constant 1 : index
      %c0_83 = arith.constant 0 : index
      %c0_84 = arith.constant 0 : index
      %244 = vector.load %arg4[%c0_82, %c1, %c0_83, %c0_84] : memref<1x3x16x16xf32, #tpu.memory_space<vmem>>, vector<1x1x16x16xf32>
      %245 = vector.shape_cast %244 : vector<1x1x16x16xf32> to vector<16x16xf32>
      %246 = vector.shape_cast %243 : vector<16x16xf32> to vector<1x1x16x16xf32>
      tpu.vector_store %arg4[%c0_82, %c1, %c0_83, %c0_84], %246 {strides = array<i32>} : memref<1x3x16x16xf32, #tpu.memory_space<vmem>>, vector<1x1x16x16xf32>,
      %cst_85 = arith.constant 0.000000e+00 : f32
      %cst_86 = arith.constant 1.000000e+00 : f32
      %247 = vector.broadcast %cst_85 : f32 to vector<16x16xf32>
      %248 = arith.maximumf %247, %232 : vector<16x16xf32>
      %249 = vector.broadcast %cst_86 : f32 to vector<16x16xf32>
      %250 = arith.minimumf %249, %248 : vector<16x16xf32>
      %c0_87 = arith.constant 0 : index
      %c2 = arith.constant 2 : index
      %c0_88 = arith.constant 0 : index
      %c0_89 = arith.constant 0 : index
      %251 = vector.load %arg4[%c0_87, %c2, %c0_88, %c0_89] : memref<1x3x16x16xf32, #tpu.memory_space<vmem>>, vector<1x1x16x16xf32>
      %252 = vector.shape_cast %251 : vector<1x1x16x16xf32> to vector<16x16xf32>
      %253 = vector.shape_cast %250 : vector<16x16xf32> to vector<1x1x16x16xf32>
      tpu.vector_store %arg4[%c0_87, %c2, %c0_88, %c0_89], %253 {strides = array<i32>} : memref<1x3x16x16xf32, #tpu.memory_space<vmem>>, vector<1x1x16x16xf32>,
    } else {
    }
    %36 = arith.extui %18 : i1 to i32
    %c0_i32_17 = arith.constant 0 : i32
    %37 = arith.cmpi ne, %36, %c0_i32_17 : i32
    scf.if %37 {
      %c0 = arith.constant 0 : index
      %c0_19 = arith.constant 0 : index
      %c0_20 = arith.constant 0 : index
      %c0_21 = arith.constant 0 : index
      %40 = vector.load %arg4[%c0, %c0_19, %c0_20, %c0_21] : memref<1x3x16x16xf32, #tpu.memory_space<vmem>>, vector<1x3x16x16xf32>
      %41 = vector.shape_cast %40 : vector<1x3x16x16xf32> to vector<3x16x16xf32>
      %42 = vector.extract_strided_slice %41 {offsets = [0, 0, 0], sizes = [1, 16, 16], strides = [1, 1, 1]} : vector<3x16x16xf32> to vector<1x16x16xf32>
      %43 = vector.shape_cast %42 : vector<1x16x16xf32> to vector<16x16xf32>
      %cst = arith.constant 2.990000e-01 : f32
      %44 = vector.broadcast %cst : f32 to vector<16x16xf32>
      %45 = arith.mulf %44, %43 : vector<16x16xf32>
      %46 = vector.extract_strided_slice %41 {offsets = [1, 0, 0], sizes = [1, 16, 16], strides = [1, 1, 1]} : vector<3x16x16xf32> to vector<1x16x16xf32>
      %47 = vector.shape_cast %46 : vector<1x16x16xf32> to vector<16x16xf32>
      %cst_22 = arith.constant 5.870000e-01 : f32
      %48 = vector.broadcast %cst_22 : f32 to vector<16x16xf32>
      %49 = arith.mulf %48, %47 : vector<16x16xf32>
      %50 = arith.addf %45, %49 : vector<16x16xf32>
      %51 = vector.extract_strided_slice %41 {offsets = [2, 0, 0], sizes = [1, 16, 16], strides = [1, 1, 1]} : vector<3x16x16xf32> to vector<1x16x16xf32>
      %52 = vector.shape_cast %51 : vector<1x16x16xf32> to vector<16x16xf32>
      %cst_23 = arith.constant 1.140000e-01 : f32
      %53 = vector.broadcast %cst_23 : f32 to vector<16x16xf32>
      %54 = arith.mulf %53, %52 : vector<16x16xf32>
      %55 = arith.addf %50, %54 : vector<16x16xf32>
      %56 = vector.shape_cast %55 : vector<16x16xf32> to vector<1x16x16xf32>
      %57 = vector.shape_cast %56 : vector<1x16x16xf32> to vector<1x16x16xf32>
      %58 = vector.broadcast %57 : vector<1x16x16xf32> to vector<3x16x16xf32>
      %c0_24 = arith.constant 0 : index
      %c0_25 = arith.constant 0 : index
      %c0_26 = arith.constant 0 : index
      %c0_27 = arith.constant 0 : index
      %59 = vector.load %arg4[%c0_24, %c0_25, %c0_26, %c0_27] : memref<1x3x16x16xf32, #tpu.memory_space<vmem>>, vector<1x3x16x16xf32>
      %60 = vector.shape_cast %59 : vector<1x3x16x16xf32> to vector<3x16x16xf32>
      %61 = vector.shape_cast %58 : vector<3x16x16xf32> to vector<1x3x16x16xf32>
      tpu.vector_store %arg4[%c0_24, %c0_25, %c0_26, %c0_27], %61 {strides = array<i32>} : memref<1x3x16x16xf32, #tpu.memory_space<vmem>>, vector<1x3x16x16xf32>,
    } else {
    }
    %38 = arith.extui %24 : i1 to i32
    %c0_i32_18 = arith.constant 0 : i32
    %39 = arith.cmpi ne, %38, %c0_i32_18 : i32
    scf.if %39 {
      %c4_i32_19 = arith.constant 4 : i32
      %40 = arith.addi %28, %c4_i32_19 : i32
      %c0_i32_20 = arith.constant 0 : i32
      %41 = arith.addi %40, %c0_i32_20 : i32
      %42 = arith.index_cast %41 : i32 to index
      %43 = memref.load %arg3[%42] : memref<26xf32, #tpu.memory_space<smem>>
      %c4_i32_21 = arith.constant 4 : i32
      %44 = arith.addi %28, %c4_i32_21 : i32
      %c1_i32_22 = arith.constant 1 : i32
      %45 = arith.addi %44, %c1_i32_22 : i32
      %46 = arith.index_cast %45 : i32 to index
      %47 = memref.load %arg3[%46] : memref<26xf32, #tpu.memory_space<smem>>
      %c4_i32_23 = arith.constant 4 : i32
      %48 = arith.addi %28, %c4_i32_23 : i32
      %c2_i32_24 = arith.constant 2 : i32
      %49 = arith.addi %48, %c2_i32_24 : i32
      %50 = arith.index_cast %49 : i32 to index
      %51 = memref.load %arg3[%50] : memref<26xf32, #tpu.memory_space<smem>>
      %c4_i32_25 = arith.constant 4 : i32
      %52 = arith.addi %28, %c4_i32_25 : i32
      %c3_i32_26 = arith.constant 3 : i32
      %53 = arith.addi %52, %c3_i32_26 : i32
      %54 = arith.index_cast %53 : i32 to index
      %55 = memref.load %arg3[%54] : memref<26xf32, #tpu.memory_space<smem>>
      %c4_i32_27 = arith.constant 4 : i32
      %56 = arith.addi %28, %c4_i32_27 : i32
      %c4_i32_28 = arith.constant 4 : i32
      %57 = arith.addi %56, %c4_i32_28 : i32
      %58 = arith.index_cast %57 : i32 to index
      %59 = memref.load %arg3[%58] : memref<26xf32, #tpu.memory_space<smem>>
      %c4_i32_29 = arith.constant 4 : i32
      %60 = arith.addi %28, %c4_i32_29 : i32
      %c5_i32 = arith.constant 5 : i32
      %61 = arith.addi %60, %c5_i32 : i32
      %62 = arith.index_cast %61 : i32 to index
      %63 = memref.load %arg3[%62] : memref<26xf32, #tpu.memory_space<smem>>
      %c4_i32_30 = arith.constant 4 : i32
      %64 = arith.addi %28, %c4_i32_30 : i32
      %c6_i32 = arith.constant 6 : i32
      %65 = arith.addi %64, %c6_i32 : i32
      %66 = arith.index_cast %65 : i32 to index
      %67 = memref.load %arg3[%66] : memref<26xf32, #tpu.memory_space<smem>>
      %c4_i32_31 = arith.constant 4 : i32
      %68 = arith.addi %28, %c4_i32_31 : i32
      %c7_i32 = arith.constant 7 : i32
      %69 = arith.addi %68, %c7_i32 : i32
      %70 = arith.index_cast %69 : i32 to index
      %71 = memref.load %arg3[%70] : memref<26xf32, #tpu.memory_space<smem>>
      %c4_i32_32 = arith.constant 4 : i32
      %72 = arith.addi %28, %c4_i32_32 : i32
      %c8_i32 = arith.constant 8 : i32
      %73 = arith.addi %72, %c8_i32 : i32
      %74 = arith.index_cast %73 : i32 to index
      %75 = memref.load %arg3[%74] : memref<26xf32, #tpu.memory_space<smem>>
      %c0 = arith.constant 0 : index
      %c0_33 = arith.constant 0 : index
      %c0_34 = arith.constant 0 : index
      %c0_35 = arith.constant 0 : index
      %76 = vector.load %arg4[%c0, %c0_33, %c0_34, %c0_35] : memref<1x3x16x16xf32, #tpu.memory_space<vmem>>, vector<1x3x16x16xf32>
      %77 = vector.shape_cast %76 : vector<1x3x16x16xf32> to vector<3x16x16xf32>
      %c0_36 = arith.constant 0 : index
      %c4 = arith.constant 4 : index
      %c0_37 = arith.constant 0 : index
      %78 = vector.load %arg6[%c0_36, %c4, %c0_37] : memref<3x24x24xf32, #tpu.memory_space<vmem>>, vector<3x16x16xf32>
      tpu.vector_store %arg6[%c0_36, %c4, %c0_37], %77 {strides = array<i32>} : memref<3x24x24xf32, #tpu.memory_space<vmem>>, vector<3x16x16xf32>,
      %79 = vector.extract_strided_slice %77 {offsets = [0, 4, 0], sizes = [3, 1, 16], strides = [1, 1, 1]} : vector<3x16x16xf32> to vector<3x1x16xf32>
      %c0_38 = arith.constant 0 : index
      %c0_39 = arith.constant 0 : index
      %c0_40 = arith.constant 0 : index
      %80 = vector.load %arg6[%c0_38, %c0_39, %c0_40] : memref<3x24x24xf32, #tpu.memory_space<vmem>>, vector<3x1x16xf32>
      tpu.vector_store %arg6[%c0_38, %c0_39, %c0_40], %79 {strides = array<i32>} : memref<3x24x24xf32, #tpu.memory_space<vmem>>, vector<3x1x16xf32>,
      %81 = vector.extract_strided_slice %77 {offsets = [0, 14, 0], sizes = [3, 1, 16], strides = [1, 1, 1]} : vector<3x16x16xf32> to vector<3x1x16xf32>
      %c0_41 = arith.constant 0 : index
      %c20 = arith.constant 20 : index
      %c0_42 = arith.constant 0 : index
      %82 = vector.load %arg6[%c0_41, %c20, %c0_42] : memref<3x24x24xf32, #tpu.memory_space<vmem>>, vector<3x1x16xf32>
      tpu.vector_store %arg6[%c0_41, %c20, %c0_42], %81 {strides = array<i32>} : memref<3x24x24xf32, #tpu.memory_space<vmem>>, vector<3x1x16xf32>,
      %83 = vector.extract_strided_slice %77 {offsets = [0, 3, 0], sizes = [3, 1, 16], strides = [1, 1, 1]} : vector<3x16x16xf32> to vector<3x1x16xf32>
      %c0_43 = arith.constant 0 : index
      %c1 = arith.constant 1 : index
      %c0_44 = arith.constant 0 : index
      %84 = vector.load %arg6[%c0_43, %c1, %c0_44] : memref<3x24x24xf32, #tpu.memory_space<vmem>>, vector<3x1x16xf32>
      tpu.vector_store %arg6[%c0_43, %c1, %c0_44], %83 {strides = array<i32>} : memref<3x24x24xf32, #tpu.memory_space<vmem>>, vector<3x1x16xf32>,
      %85 = vector.extract_strided_slice %77 {offsets = [0, 13, 0], sizes = [3, 1, 16], strides = [1, 1, 1]} : vector<3x16x16xf32> to vector<3x1x16xf32>
      %c0_45 = arith.constant 0 : index
      %c21 = arith.constant 21 : index
      %c0_46 = arith.constant 0 : index
      %86 = vector.load %arg6[%c0_45, %c21, %c0_46] : memref<3x24x24xf32, #tpu.memory_space<vmem>>, vector<3x1x16xf32>
      tpu.vector_store %arg6[%c0_45, %c21, %c0_46], %85 {strides = array<i32>} : memref<3x24x24xf32, #tpu.memory_space<vmem>>, vector<3x1x16xf32>,
      %87 = vector.extract_strided_slice %77 {offsets = [0, 2, 0], sizes = [3, 1, 16], strides = [1, 1, 1]} : vector<3x16x16xf32> to vector<3x1x16xf32>
      %c0_47 = arith.constant 0 : index
      %c2 = arith.constant 2 : index
      %c0_48 = arith.constant 0 : index
      %88 = vector.load %arg6[%c0_47, %c2, %c0_48] : memref<3x24x24xf32, #tpu.memory_space<vmem>>, vector<3x1x16xf32>
      tpu.vector_store %arg6[%c0_47, %c2, %c0_48], %87 {strides = array<i32>} : memref<3x24x24xf32, #tpu.memory_space<vmem>>, vector<3x1x16xf32>,
      %89 = vector.extract_strided_slice %77 {offsets = [0, 12, 0], sizes = [3, 1, 16], strides = [1, 1, 1]} : vector<3x16x16xf32> to vector<3x1x16xf32>
      %c0_49 = arith.constant 0 : index
      %c22 = arith.constant 22 : index
      %c0_50 = arith.constant 0 : index
      %90 = vector.load %arg6[%c0_49, %c22, %c0_50] : memref<3x24x24xf32, #tpu.memory_space<vmem>>, vector<3x1x16xf32>
      tpu.vector_store %arg6[%c0_49, %c22, %c0_50], %89 {strides = array<i32>} : memref<3x24x24xf32, #tpu.memory_space<vmem>>, vector<3x1x16xf32>,
      %91 = vector.extract_strided_slice %77 {offsets = [0, 1, 0], sizes = [3, 1, 16], strides = [1, 1, 1]} : vector<3x16x16xf32> to vector<3x1x16xf32>
      %c0_51 = arith.constant 0 : index
      %c3 = arith.constant 3 : index
      %c0_52 = arith.constant 0 : index
      %92 = vector.load %arg6[%c0_51, %c3, %c0_52] : memref<3x24x24xf32, #tpu.memory_space<vmem>>, vector<3x1x16xf32>
      tpu.vector_store %arg6[%c0_51, %c3, %c0_52], %91 {strides = array<i32>} : memref<3x24x24xf32, #tpu.memory_space<vmem>>, vector<3x1x16xf32>,
      %93 = vector.extract_strided_slice %77 {offsets = [0, 11, 0], sizes = [3, 1, 16], strides = [1, 1, 1]} : vector<3x16x16xf32> to vector<3x1x16xf32>
      %c0_53 = arith.constant 0 : index
      %c23 = arith.constant 23 : index
      %c0_54 = arith.constant 0 : index
      %94 = vector.load %arg6[%c0_53, %c23, %c0_54] : memref<3x24x24xf32, #tpu.memory_space<vmem>>, vector<3x1x16xf32>
      tpu.vector_store %arg6[%c0_53, %c23, %c0_54], %93 {strides = array<i32>} : memref<3x24x24xf32, #tpu.memory_space<vmem>>, vector<3x1x16xf32>,
      %c0_55 = arith.constant 0 : index
      %c0_56 = arith.constant 0 : index
      %c0_57 = arith.constant 0 : index
      %95 = vector.load %arg6[%c0_55, %c0_56, %c0_57] : memref<3x24x24xf32, #tpu.memory_space<vmem>>, vector<3x16x16xf32>
      %96 = vector.broadcast %43 : f32 to vector<3x16x16xf32>
      %97 = arith.mulf %96, %95 : vector<3x16x16xf32>
      %c0_58 = arith.constant 0 : index
      %c1_59 = arith.constant 1 : index
      %c0_60 = arith.constant 0 : index
      %98 = vector.load %arg6[%c0_58, %c1_59, %c0_60] : memref<3x24x24xf32, #tpu.memory_space<vmem>>, vector<3x16x16xf32>
      %99 = vector.broadcast %47 : f32 to vector<3x16x16xf32>
      %100 = arith.mulf %99, %98 : vector<3x16x16xf32>
      %101 = arith.addf %97, %100 : vector<3x16x16xf32>
      %c0_61 = arith.constant 0 : index
      %c2_62 = arith.constant 2 : index
      %c0_63 = arith.constant 0 : index
      %102 = vector.load %arg6[%c0_61, %c2_62, %c0_63] : memref<3x24x24xf32, #tpu.memory_space<vmem>>, vector<3x16x16xf32>
      %103 = vector.broadcast %51 : f32 to vector<3x16x16xf32>
      %104 = arith.mulf %103, %102 : vector<3x16x16xf32>
      %105 = arith.addf %101, %104 : vector<3x16x16xf32>
      %c0_64 = arith.constant 0 : index
      %c3_65 = arith.constant 3 : index
      %c0_66 = arith.constant 0 : index
      %106 = vector.load %arg6[%c0_64, %c3_65, %c0_66] : memref<3x24x24xf32, #tpu.memory_space<vmem>>, vector<3x16x16xf32>
      %107 = vector.broadcast %55 : f32 to vector<3x16x16xf32>
      %108 = arith.mulf %107, %106 : vector<3x16x16xf32>
      %109 = arith.addf %105, %108 : vector<3x16x16xf32>
      %c0_67 = arith.constant 0 : index
      %c4_68 = arith.constant 4 : index
      %c0_69 = arith.constant 0 : index
      %110 = vector.load %arg6[%c0_67, %c4_68, %c0_69] : memref<3x24x24xf32, #tpu.memory_space<vmem>>, vector<3x16x16xf32>
      %111 = vector.broadcast %59 : f32 to vector<3x16x16xf32>
      %112 = arith.mulf %111, %110 : vector<3x16x16xf32>
      %113 = arith.addf %109, %112 : vector<3x16x16xf32>
      %c0_70 = arith.constant 0 : index
      %c5 = arith.constant 5 : index
      %c0_71 = arith.constant 0 : index
      %114 = vector.load %arg6[%c0_70, %c5, %c0_71] : memref<3x24x24xf32, #tpu.memory_space<vmem>>, vector<3x16x16xf32>
      %115 = vector.broadcast %63 : f32 to vector<3x16x16xf32>
      %116 = arith.mulf %115, %114 : vector<3x16x16xf32>
      %117 = arith.addf %113, %116 : vector<3x16x16xf32>
      %c0_72 = arith.constant 0 : index
      %c6 = arith.constant 6 : index
      %c0_73 = arith.constant 0 : index
      %118 = vector.load %arg6[%c0_72, %c6, %c0_73] : memref<3x24x24xf32, #tpu.memory_space<vmem>>, vector<3x16x16xf32>
      %119 = vector.broadcast %67 : f32 to vector<3x16x16xf32>
      %120 = arith.mulf %119, %118 : vector<3x16x16xf32>
      %121 = arith.addf %117, %120 : vector<3x16x16xf32>
      %c0_74 = arith.constant 0 : index
      %c7 = arith.constant 7 : index
      %c0_75 = arith.constant 0 : index
      %122 = vector.load %arg6[%c0_74, %c7, %c0_75] : memref<3x24x24xf32, #tpu.memory_space<vmem>>, vector<3x16x16xf32>
      %123 = vector.broadcast %71 : f32 to vector<3x16x16xf32>
      %124 = arith.mulf %123, %122 : vector<3x16x16xf32>
      %125 = arith.addf %121, %124 : vector<3x16x16xf32>
      %c0_76 = arith.constant 0 : index
      %c8 = arith.constant 8 : index
      %c0_77 = arith.constant 0 : index
      %126 = vector.load %arg6[%c0_76, %c8, %c0_77] : memref<3x24x24xf32, #tpu.memory_space<vmem>>, vector<3x16x16xf32>
      %127 = vector.broadcast %75 : f32 to vector<3x16x16xf32>
      %128 = arith.mulf %127, %126 : vector<3x16x16xf32>
      %129 = arith.addf %125, %128 : vector<3x16x16xf32>
      %c0_78 = arith.constant 0 : index
      %c0_79 = arith.constant 0 : index
      %c4_80 = arith.constant 4 : index
      %130 = vector.load %arg6[%c0_78, %c0_79, %c4_80] : memref<3x24x24xf32, #tpu.memory_space<vmem>>, vector<3x16x16xf32>
      tpu.vector_store %arg6[%c0_78, %c0_79, %c4_80], %129 {strides = array<i32>} : memref<3x24x24xf32, #tpu.memory_space<vmem>>, vector<3x16x16xf32>,
      %131 = vector.extract_strided_slice %129 {offsets = [0, 0, 4], sizes = [3, 16, 1], strides = [1, 1, 1]} : vector<3x16x16xf32> to vector<3x16x1xf32>
      %c0_81 = arith.constant 0 : index
      %c0_82 = arith.constant 0 : index
      %c0_83 = arith.constant 0 : index
      %132 = vector.load %arg6[%c0_81, %c0_82, %c0_83] : memref<3x24x24xf32, #tpu.memory_space<vmem>>, vector<3x16x1xf32>
      tpu.vector_store %arg6[%c0_81, %c0_82, %c0_83], %131 {strides = array<i32>} : memref<3x24x24xf32, #tpu.memory_space<vmem>>, vector<3x16x1xf32>,
      %133 = vector.extract_strided_slice %129 {offsets = [0, 0, 14], sizes = [3, 16, 1], strides = [1, 1, 1]} : vector<3x16x16xf32> to vector<3x16x1xf32>
      %c0_84 = arith.constant 0 : index
      %c0_85 = arith.constant 0 : index
      %c20_86 = arith.constant 20 : index
      %134 = vector.load %arg6[%c0_84, %c0_85, %c20_86] : memref<3x24x24xf32, #tpu.memory_space<vmem>>, vector<3x16x1xf32>
      tpu.vector_store %arg6[%c0_84, %c0_85, %c20_86], %133 {strides = array<i32>} : memref<3x24x24xf32, #tpu.memory_space<vmem>>, vector<3x16x1xf32>,
      %135 = vector.extract_strided_slice %129 {offsets = [0, 0, 3], sizes = [3, 16, 1], strides = [1, 1, 1]} : vector<3x16x16xf32> to vector<3x16x1xf32>
      %c0_87 = arith.constant 0 : index
      %c0_88 = arith.constant 0 : index
      %c1_89 = arith.constant 1 : index
      %136 = vector.load %arg6[%c0_87, %c0_88, %c1_89] : memref<3x24x24xf32, #tpu.memory_space<vmem>>, vector<3x16x1xf32>
      tpu.vector_store %arg6[%c0_87, %c0_88, %c1_89], %135 {strides = array<i32>} : memref<3x24x24xf32, #tpu.memory_space<vmem>>, vector<3x16x1xf32>,
      %137 = vector.extract_strided_slice %129 {offsets = [0, 0, 13], sizes = [3, 16, 1], strides = [1, 1, 1]} : vector<3x16x16xf32> to vector<3x16x1xf32>
      %c0_90 = arith.constant 0 : index
      %c0_91 = arith.constant 0 : index
      %c21_92 = arith.constant 21 : index
      %138 = vector.load %arg6[%c0_90, %c0_91, %c21_92] : memref<3x24x24xf32, #tpu.memory_space<vmem>>, vector<3x16x1xf32>
      tpu.vector_store %arg6[%c0_90, %c0_91, %c21_92], %137 {strides = array<i32>} : memref<3x24x24xf32, #tpu.memory_space<vmem>>, vector<3x16x1xf32>,
      %139 = vector.extract_strided_slice %129 {offsets = [0, 0, 2], sizes = [3, 16, 1], strides = [1, 1, 1]} : vector<3x16x16xf32> to vector<3x16x1xf32>
      %c0_93 = arith.constant 0 : index
      %c0_94 = arith.constant 0 : index
      %c2_95 = arith.constant 2 : index
      %140 = vector.load %arg6[%c0_93, %c0_94, %c2_95] : memref<3x24x24xf32, #tpu.memory_space<vmem>>, vector<3x16x1xf32>
      tpu.vector_store %arg6[%c0_93, %c0_94, %c2_95], %139 {strides = array<i32>} : memref<3x24x24xf32, #tpu.memory_space<vmem>>, vector<3x16x1xf32>,
      %141 = vector.extract_strided_slice %129 {offsets = [0, 0, 12], sizes = [3, 16, 1], strides = [1, 1, 1]} : vector<3x16x16xf32> to vector<3x16x1xf32>
      %c0_96 = arith.constant 0 : index
      %c0_97 = arith.constant 0 : index
      %c22_98 = arith.constant 22 : index
      %142 = vector.load %arg6[%c0_96, %c0_97, %c22_98] : memref<3x24x24xf32, #tpu.memory_space<vmem>>, vector<3x16x1xf32>
      tpu.vector_store %arg6[%c0_96, %c0_97, %c22_98], %141 {strides = array<i32>} : memref<3x24x24xf32, #tpu.memory_space<vmem>>, vector<3x16x1xf32>,
      %143 = vector.extract_strided_slice %129 {offsets = [0, 0, 1], sizes = [3, 16, 1], strides = [1, 1, 1]} : vector<3x16x16xf32> to vector<3x16x1xf32>
      %c0_99 = arith.constant 0 : index
      %c0_100 = arith.constant 0 : index
      %c3_101 = arith.constant 3 : index
      %144 = vector.load %arg6[%c0_99, %c0_100, %c3_101] : memref<3x24x24xf32, #tpu.memory_space<vmem>>, vector<3x16x1xf32>
      tpu.vector_store %arg6[%c0_99, %c0_100, %c3_101], %143 {strides = array<i32>} : memref<3x24x24xf32, #tpu.memory_space<vmem>>, vector<3x16x1xf32>,
      %145 = vector.extract_strided_slice %129 {offsets = [0, 0, 11], sizes = [3, 16, 1], strides = [1, 1, 1]} : vector<3x16x16xf32> to vector<3x16x1xf32>
      %c0_102 = arith.constant 0 : index
      %c0_103 = arith.constant 0 : index
      %c23_104 = arith.constant 23 : index
      %146 = vector.load %arg6[%c0_102, %c0_103, %c23_104] : memref<3x24x24xf32, #tpu.memory_space<vmem>>, vector<3x16x1xf32>
      tpu.vector_store %arg6[%c0_102, %c0_103, %c23_104], %145 {strides = array<i32>} : memref<3x24x24xf32, #tpu.memory_space<vmem>>, vector<3x16x1xf32>,
      %c0_105 = arith.constant 0 : index
      %c0_106 = arith.constant 0 : index
      %c0_107 = arith.constant 0 : index
      %147 = vector.load %arg6[%c0_105, %c0_106, %c0_107] : memref<3x24x24xf32, #tpu.memory_space<vmem>>, vector<3x16x16xf32>
      %148 = vector.broadcast %43 : f32 to vector<3x16x16xf32>
      %149 = arith.mulf %148, %147 : vector<3x16x16xf32>
      %c0_108 = arith.constant 0 : index
      %c0_109 = arith.constant 0 : index
      %c1_110 = arith.constant 1 : index
      %150 = vector.load %arg6[%c0_108, %c0_109, %c1_110] : memref<3x24x24xf32, #tpu.memory_space<vmem>>, vector<3x16x16xf32>
      %151 = vector.broadcast %47 : f32 to vector<3x16x16xf32>
      %152 = arith.mulf %151, %150 : vector<3x16x16xf32>
      %153 = arith.addf %149, %152 : vector<3x16x16xf32>
      %c0_111 = arith.constant 0 : index
      %c0_112 = arith.constant 0 : index
      %c2_113 = arith.constant 2 : index
      %154 = vector.load %arg6[%c0_111, %c0_112, %c2_113] : memref<3x24x24xf32, #tpu.memory_space<vmem>>, vector<3x16x16xf32>
      %155 = vector.broadcast %51 : f32 to vector<3x16x16xf32>
      %156 = arith.mulf %155, %154 : vector<3x16x16xf32>
      %157 = arith.addf %153, %156 : vector<3x16x16xf32>
      %c0_114 = arith.constant 0 : index
      %c0_115 = arith.constant 0 : index
      %c3_116 = arith.constant 3 : index
      %158 = vector.load %arg6[%c0_114, %c0_115, %c3_116] : memref<3x24x24xf32, #tpu.memory_space<vmem>>, vector<3x16x16xf32>
      %159 = vector.broadcast %55 : f32 to vector<3x16x16xf32>
      %160 = arith.mulf %159, %158 : vector<3x16x16xf32>
      %161 = arith.addf %157, %160 : vector<3x16x16xf32>
      %c0_117 = arith.constant 0 : index
      %c0_118 = arith.constant 0 : index
      %c4_119 = arith.constant 4 : index
      %162 = vector.load %arg6[%c0_117, %c0_118, %c4_119] : memref<3x24x24xf32, #tpu.memory_space<vmem>>, vector<3x16x16xf32>
      %163 = vector.broadcast %59 : f32 to vector<3x16x16xf32>
      %164 = arith.mulf %163, %162 : vector<3x16x16xf32>
      %165 = arith.addf %161, %164 : vector<3x16x16xf32>
      %c0_120 = arith.constant 0 : index
      %c0_121 = arith.constant 0 : index
      %c5_122 = arith.constant 5 : index
      %166 = vector.load %arg6[%c0_120, %c0_121, %c5_122] : memref<3x24x24xf32, #tpu.memory_space<vmem>>, vector<3x16x16xf32>
      %167 = vector.broadcast %63 : f32 to vector<3x16x16xf32>
      %168 = arith.mulf %167, %166 : vector<3x16x16xf32>
      %169 = arith.addf %165, %168 : vector<3x16x16xf32>
      %c0_123 = arith.constant 0 : index
      %c0_124 = arith.constant 0 : index
      %c6_125 = arith.constant 6 : index
      %170 = vector.load %arg6[%c0_123, %c0_124, %c6_125] : memref<3x24x24xf32, #tpu.memory_space<vmem>>, vector<3x16x16xf32>
      %171 = vector.broadcast %67 : f32 to vector<3x16x16xf32>
      %172 = arith.mulf %171, %170 : vector<3x16x16xf32>
      %173 = arith.addf %169, %172 : vector<3x16x16xf32>
      %c0_126 = arith.constant 0 : index
      %c0_127 = arith.constant 0 : index
      %c7_128 = arith.constant 7 : index
      %174 = vector.load %arg6[%c0_126, %c0_127, %c7_128] : memref<3x24x24xf32, #tpu.memory_space<vmem>>, vector<3x16x16xf32>
      %175 = vector.broadcast %71 : f32 to vector<3x16x16xf32>
      %176 = arith.mulf %175, %174 : vector<3x16x16xf32>
      %177 = arith.addf %173, %176 : vector<3x16x16xf32>
      %c0_129 = arith.constant 0 : index
      %c0_130 = arith.constant 0 : index
      %c8_131 = arith.constant 8 : index
      %178 = vector.load %arg6[%c0_129, %c0_130, %c8_131] : memref<3x24x24xf32, #tpu.memory_space<vmem>>, vector<3x16x16xf32>
      %179 = vector.broadcast %75 : f32 to vector<3x16x16xf32>
      %180 = arith.mulf %179, %178 : vector<3x16x16xf32>
      %181 = arith.addf %177, %180 : vector<3x16x16xf32>
      %c0_132 = arith.constant 0 : index
      %c0_133 = arith.constant 0 : index
      %c0_134 = arith.constant 0 : index
      %c0_135 = arith.constant 0 : index
      %182 = vector.load %arg4[%c0_132, %c0_133, %c0_134, %c0_135] : memref<1x3x16x16xf32, #tpu.memory_space<vmem>>, vector<1x3x16x16xf32>
      %183 = vector.shape_cast %182 : vector<1x3x16x16xf32> to vector<3x16x16xf32>
      %184 = vector.shape_cast %181 : vector<3x16x16xf32> to vector<1x3x16x16xf32>
      tpu.vector_store %arg4[%c0_132, %c0_133, %c0_134, %c0_135], %184 {strides = array<i32>} : memref<1x3x16x16xf32, #tpu.memory_space<vmem>>, vector<1x3x16x16xf32>,
    } else {
    }
    return
  }
  func.func @transform_0(%arg0: i32, %arg1: memref<8xi32, #tpu.memory_space<smem>>) -> (i32, i32, i32, i32) {
    %c0_i32 = arith.constant 0 : i32
    %c0_i32_0 = arith.constant 0 : i32
    %c0_i32_1 = arith.constant 0 : i32
    %c0_i32_2 = arith.constant 0 : i32
    return %arg0, %c0_i32, %c0_i32_0, %c0_i32_1 : i32, i32, i32, i32
  }
  func.func @transform_1(%arg0: i32, %arg1: memref<8xi32, #tpu.memory_space<smem>>) -> i32 {
    %c0_i32 = arith.constant 0 : i32
    %c0_i32_0 = arith.constant 0 : i32
    return %c0_i32 : i32
  }
  func.func @transform_2(%arg0: i32, %arg1: memref<8xi32, #tpu.memory_space<smem>>) -> (i32, i32, i32, i32) {
    %c0_i32 = arith.constant 0 : i32
    %c0_i32_0 = arith.constant 0 : i32
    %c0_i32_1 = arith.constant 0 : i32
    %c0_i32_2 = arith.constant 0 : i32
    return %arg0, %c0_i32, %c0_i32_0, %c0_i32_1 : i32, i32, i32, i32
  }
}

</mosaic_0001>

<bundles_post_ra>
// kernel: tpu_custom_call.1
= control target key start
LH: loop header
LB: loop body
LE: loop exit
PB: predicated region body
PF: predicated region fallthrough
CT: control target
= control target key end

     0   :  { %s1719_s15 = smov [#allocation5]   ;;  %s2534_s0 = inlined_call_operand.vmem [shape: s32[8], index: 0, kind: input, shape index: {}]   ;;  %s2535_s1 = inlined_call_operand.hbm [shape: f32[2,3,16,16], index: 1, kind: input, shape index: {}, may-alias: {1,3}]   ;;  %s2536_s2 = inlined_call_operand.vmem [shape: f32[26], index: 2, kind: input, shape index: {}]   ;;  %s2537_s3 = inlined_call_operand.hbm [shape: f32[2,3,16,16], index: 3, kind: output, shape index: {}, may-alias: {1,3}]  }
   0x1   :  { %s9_s14 = sshll.u32 %s2534_s0, 4  ;;  %s10_s14 = int_to_ptr.vmem [resolvable:$true] %s9_s14 }
   0x2   :  { %12 = dma.vmem_to_smem %s10_s14, 16, %s1719_s15, [#allocation4] }
   0x3   :  { %1689 = dma.done.wait [#allocation4], 16 }
   0x4   :  { %1690 = vsyncadd [#allocation4], 4294967280 }
   0x5   :  { %15 = sfence }
   0x6   :  { %16 = vsyncpa [#allocation7], 0 }
   0x7   :  { %18 = vsyncpa [#allocation7 + $0x1], 0 }
   0x8   :  { %19 = vsyncpa [#allocation9], 0 }
   0x9   :  { %20 = vsyncpa [#allocation8], 0 }
   0xa   :  { %22 = vsyncpa [#allocation8 + $0x1], 0  ;;  %s1763_s16 = smov 0   ;;  %s1765_s17 = smov 0  }
   0xb   :  { %s1767_s18 = smov 0   ;;  %s1769_s19 = smov 0  }
   0xc LB: > { %s1784_s0 = sadd.s32 4294967295, %s1717_s19   ;;  %s1456_s20 = sadd.s32 4294967294, %s1717_s19   ;;  %s1717_s19 = sphi %s1769_s19, %s2548_s19   ;;  %s1713_s18 = sphi %s1767_s18, %s2547_s18   ;;  %s1709_s17 = sphi %s1765_s17, %s2546_s17   ;;  %s1705_s16 = sphi %s1763_s16, %s2545_s16  }
   0xd   : > { %s1788_s21 = sadd.s32 1, %s1717_s19   ;;  %s35_s22 = sadd.s32 1, %s1713_s18 }
   0xe   : > { %s32_s23 = ssub.s32 %s1717_s19, %s1788_s21  ;;  %p42_p0 = scmp.ne.s32.totalorder %s1713_s18, %s1709_s17 }
   0xf   : > { %p33_p1 = scmp.eq.s32.totalorder %s32_s23, 0  ;;  %p43_p2 = scmp.eq.s32.totalorder %s1717_s19, 0 }
  0x10   : > { %p48_p3 = scmp.ne.s32.totalorder %s1709_s17, %s1705_s16  ;;  %p49_p4 = scmp.eq.s32.totalorder %s1784_s0, 0 }
  0x11   : > { %s1800_s24 = scalar_select %p33_p1, %s1713_s18, %s35_s22  }
  0x12   : > { %p1802_p5 = por %p43_p2, %p42_p0  ;;  %p1808_p6 = por %p49_p4, %p48_p3 }
  0x13   : > { %p93_p7 = scmp.eq.s32.totalorder %s1784_s0, 1  ;;  %p99_p8 = scmp.eq.s32.totalorder %s1456_s20, 1 }
  0x14   : > { %p1457_p9 = scmp.ge.s32.totalorder %s1717_s19, 1  ;;  %p106_p10 = scmp.lt.s32.totalorder %s1717_s19, 3 }
  0x15   : > { %p1815_p11 = por %p93_p7, %p42_p0  ;;  %p1819_p12 = por %p99_p8, %p48_p3 }
  0x16   : > { %p1823_p13 = pnand %p1457_p9, %p106_p10  ;;  %s118_s5 = sshll.u32 %s2536_s2, 4  ;;  %s119_s5 = int_to_ptr.vmem [resolvable:$true] %s118_s5 }
  0x17   : > { %p1524_p2 = scmp.lt.s32.totalorder %s1717_s19, 2  ;;  %s129_s6 = sand.u32 1, %s1713_s18  }
  0x18   : > { %p1511_p1 = pneg %p1823_p13  ;;  %s1497_s8 = smul.u32 48, %s129_s6 }
  0x19   : > { %p1839_p3 = pnand %p1524_p2, %p1802_p5  ;;  %s1720_s9 = smov [#allocation10]  }
  0x1a   : > { %p1512_p7 = pnand %p1511_p1, %p49_p4  ;;  %s1498_s10 = smul.u32 48, %s1717_s19 }
  0x1b   : > { %s133_s11 = scalar_lea.vmem [#allocation6], %s1497_s8  ;;  %s130_s22 = scalar_lea.sflag [#allocation7], %s129_s6 }
  0x1c   : > { %1514 = dma.vmem_to_smem (!%p1512_p7), %s119_s5, 16, %s1720_s9, [#allocation9]  }
  0x1d   : > { %s141_s12 = sshll.u32 %s133_s11, 4  ;;  %s138_s15 = scalar_lea.hbm %s2535_s1, %s1498_s10  ;;  %s142_s12 = int_to_ptr.vmem [resolvable:$true] %s141_s12 }
  0x1e   : > { %s139_s20 = sshll.u32 %s138_s15, 4  ;;  %p1619_p8 = pneg %p1839_p3  ;;  %s140_s20 = int_to_ptr.hbm [resolvable:$true] %s139_s20 }
  0x1f   : > { %s1615_s23 = sshra.s32 %s140_s20, 4  ;;  %s1622_s5 = scalar_lea.hbm %s2535_s1, 96  ;;  %s1616_s23 = int_to_ptr.hbm [resolvable:$true] %s1615_s23 }
  0x20   : > { %s1617_s25 = scalar_lea.hbm %s1616_s23, 48  ;;  %p1623_p1 = scmp.lt.s32.totalorder %s1616_s23, %s2535_s1 }
  0x21   : > { %p1618_p5 = scmp.ne.s32.totalorder %s1616_s23, %s1617_s25  ;;  %p1624_p2 = scmp.lt.s32.totalorder %s1622_s5, %s1617_s25 }
  0x23   : > { %p1620_p9 = pnand %p1619_p8, %p1618_p5  ;;  %p1625_p7 = por %p1624_p2, %p1623_p1 }
  0x25   : > { %p1621_p10 = pneg %p1620_p9 }
  0x27   : > { %p1626_p0 = pnand %p1625_p7, %p1621_p10 }
  0x29   : > { %1629 = shalt.err (!%p1626_p0)
}
  0x2a   : > { %s1721_s6 = smov 128   ;;  %s1722_s10 = smov 8  }
  0x2b   : > { %1518 = dma.hbm_to_vmem [thread:$0]  (!%p1839_p3), %s140_s20, 768, %s142_s12, %s130_s22, %s1721_s6, %s1721_s6, %s1722_s10  }
  0x2c   : > { %153 = sbr.rel (%p1823_p13) target bundleno = 1104 (0x450), region = 28  ;;  %s1860_s11 = sand.u32 (!%p1823_p13), 1, %s1709_s17  }
  0x2d   : > { %s1499_s13 = smul.u32 (!%p1823_p13), 48, %s1860_s11  ;;  %s156_s14 = scalar_lea.sflag (!%p1823_p13), [#allocation7], %s1860_s11 }
  0x2f   : > { %s1864_s15 = scalar_lea.vmem (!%p1823_p13), [#allocation6], %s1499_s13 }
  0x31   : > { %1692 = dma.done.wait (%p1808_p6), %s156_s14, 768  }
  0x32   : > { %1694 = vsyncadd (%p1808_p6), %s156_s14, 4294966528 }
  0x33   : > { %1696 = dma.done.wait (%p49_p4), [#allocation9], 16  }
  0x34   : > { %1698 = vsyncadd (%p49_p4), [#allocation9], 4294967280 }
  0x35   : > { %170 = sfence }
  0x36   : > { %s1463_s29 = sshll.u32 %s1784_s0, 2  ;;  %s1883_s30 = scalar_lea.vmem [#allocation11], %s1499_s13 }
  0x37   : > { %s1875_s7 = sld [smem:[#allocation5 + %s1463_s29]]  ;;  %s190_s12 = sadd.s32 1, %s1463_s29 }
  0x38   : > { %s1877_s20 = sld [smem:[#allocation5 + %s190_s12]]  ;;  %s193_s22 = sadd.s32 2, %s1463_s29 }
  0x39   : > { %s1879_s23 = sld [smem:[#allocation5 + %s193_s22]]  ;;  %s196_s25 = sadd.s32 3, %s1463_s29 }
  0x3a   : > { %s1881_s26 = sld [smem:[#allocation5 + %s196_s25]] }
  0x3d   : > { %p1464_p6 = scmp.le.s32.totalorder %s1875_s7, 0 }
  0x3f   : > { %201 = sbr.rel (%p1464_p6) target bundleno = 79 (0x4f), region = 40 }
  0x44   : > { %v202_v0 = vlaneseq  ;;  %vm215_vm0 = vcmask 130048   ;;  %v1723_v6 = vmov 0.0  }
  0x46   : > { %v203_v1 = vshrl.u32 %v202_v0, 7  ;;  %v206_v2 = vand.u32 127, %v202_v0 }
  0x48   : > { %v207_v3 = vadd.s32 %v206_v2, %v203_v1  ;;  %v204_v4 = vadd.s32 8, %v203_v1 }
  0x4a   : > { %vm209_vm1 = vcmp.eq.s32.totalorder %v207_v3, 15  ;;  %v208_v5 = vadd.s32 %v206_v2, %v204_v4 }
  0x4b   : > { %v1465_v7 = vsel %vm209_vm1, 1.0, %v1723_v6 }
  0x4c   : > { %216 = vst.msk [vmem:[#allocation2] sm:$0xff] %vm215_vm0, %v1465_v7  ;;  %vm210_vm2 = vcmp.eq.s32.totalorder %v208_v5, 15 }
  0x4d   : > { %v1466_v8 = vsel %vm210_vm2, 1.0, %v1723_v6 }
  0x4e   : > { %217 = vst.msk [vmem:[#allocation2 + $0x8] sm:$0xff] %vm215_vm0, %v1466_v8 }
  0x4f PF: > { %s1889_s4 = smul.u32 13, %s1784_s0 }
  0x50   : > { %221 = sbr.rel (%p1464_p6) target bundleno = 230 (0xe6), region = 44 }
  0x55   : > { %v229_v9 = vld [vmem:[#allocation2 + $0x8] sm:$0xff]  ;;  %v228_v10 = vld [vmem:[#allocation2] sm:$0xff]  ;;  %vm230_vm3 = vcmask 130048  }
  0x56   : > { %1492 = vmatpush.msra.mxu2 %v229_v9  ;;  %v225_v11 = vld [vmem:[%s1864_s15 + $0x18] sm:$0xff]  ;;  %1491 = vmatpush.msra.mxu1 %v229_v9  ;;  %v223_v12 = vld [vmem:[%s1864_s15 + $0x8] sm:$0xff]  ;;  %v222_v14 = vld [vmem:[%s1864_s15] sm:$0xff] }
  0x57   : > { %1493 = vmatpush.msra.mxu3 %v229_v9  ;;  %263 = vmatpush.msra.mxu0 %v229_v9  ;;  %v227_v13 = vld [vmem:[%s1864_s15 + $0x28] sm:$0xff]  ;;  %v226_v15 = vld [vmem:[%s1864_s15 + $0x20] sm:$0xff]  ;;  %v224_v16 = vld [vmem:[%s1864_s15 + $0x10] sm:$0xff] }
  0x58   : > { %1495 = vmatpush.msra.mxu2 %v228_v10  ;;  %1494 = vmatpush.msra.mxu1 %v228_v10 }
  0x59   : > { %1471 = vmatmul.msk.f32.vlgmr.msra.gmra.mxu2 %vm230_vm3, %v225_v11  ;;  %1469 = vmatmul.msk.f32.vlgmr.msra.gmra.mxu1 %vm230_vm3, %v223_v12 }
  0x5a   : > { %1496 = vmatpush.msra.mxu3 %v228_v10  ;;  %264 = vmatpush.msra.mxu0 %v228_v10 }
  0x5b   : > { %1473 = vmatmul.msk.f32.vlgmr.msra.gmra.mxu3 %vm230_vm3, %v227_v13  ;;  %1468 = vmatmul.msk.f32.vlgmr.msra.gmra.mxu0 %vm230_vm3, %v222_v14 }
  0x61   : > { %1472 = vmatmul.msk.f32.gmra.mxu2 %vm230_vm3, %v226_v15  ;;  %1470 = vmatmul.msk.f32.gmra.mxu1 %vm230_vm3, %v224_v16 }
  0xd6   : > { %v269_v17 = vpop.f32.mrf.mxu1 }
  0xd7   : > { %285 = vst.msk [vmem:[%s1883_s30 + $0x8] sm:$0xff] %vm230_vm3, %v269_v17 }
  0xd8   : > { %v266_v18 = vpop.f32.mrf.mxu0 }
  0xd9   : > { %284 = vst.msk [vmem:[%s1883_s30] sm:$0xff] %vm230_vm3, %v266_v18 }
  0xdc   : > { %v275_v19 = vpop.f32.mrf.mxu2 }
  0xdd   : > { %287 = vst.msk [vmem:[%s1883_s30 + $0x18] sm:$0xff] %vm230_vm3, %v275_v19 }
  0xde   : > { %v272_v20 = vpop.f32.mrf.mxu1  ;;  %v281_v21 = vpop.f32.mrf.mxu3 }
  0xdf   : > { %286 = vst.msk [vmem:[%s1883_s30 + $0x10] sm:$0xff] %vm230_vm3, %v272_v20 }
  0xe0   : > { %289 = vst.msk [vmem:[%s1883_s30 + $0x28] sm:$0xff] %vm230_vm3, %v281_v21 }
  0xe4   : > { %v278_v22 = vpop.f32.mrf.mxu2 }
  0xe5   : > { %288 = vst.msk [vmem:[%s1883_s30 + $0x20] sm:$0xff] %vm230_vm3, %v278_v22 }
  0xe6 PF: > { %p1474_p4 = scmp.gt.s32.totalorder %s1875_s7, 0 }
  0xe8   : > { %293 = sbr.rel (%p1474_p4) target bundleno = 244 (0xf4), region = 48 }
  0xed   : > { %v294_v23 = vld [vmem:[%s1864_s15] sm:$0xff]  ;;  %vm300_vm4 = vcmask 130048   ;;  %v295_v24 = vld [vmem:[%s1864_s15 + $0x8] sm:$0xff]  ;;  %v296_v25 = vld [vmem:[%s1864_s15 + $0x10] sm:$0xff] }
  0xee   : > { %301 = vst.msk [vmem:[%s1883_s30] sm:$0xff] %vm300_vm4, %v294_v23  ;;  %v297_v26 = vld [vmem:[%s1864_s15 + $0x18] sm:$0xff]  ;;  %v298_v27 = vld [vmem:[%s1864_s15 + $0x20] sm:$0xff]  ;;  %v299_v28 = vld [vmem:[%s1864_s15 + $0x28] sm:$0xff] }
  0xef   : > { %302 = vst.msk [vmem:[%s1883_s30 + $0x8] sm:$0xff] %vm300_vm4, %v295_v24 }
  0xf0   : > { %303 = vst.msk [vmem:[%s1883_s30 + $0x10] sm:$0xff] %vm300_vm4, %v296_v25 }
  0xf1   : > { %304 = vst.msk [vmem:[%s1883_s30 + $0x18] sm:$0xff] %vm300_vm4, %v297_v26 }
  0xf2   : > { %305 = vst.msk [vmem:[%s1883_s30 + $0x20] sm:$0xff] %vm300_vm4, %v298_v27 }
  0xf3   : > { %306 = vst.msk [vmem:[%s1883_s30 + $0x28] sm:$0xff] %vm300_vm4, %v299_v28 }
  0xf4 PF: > { %p1475_p13 = scmp.le.s32.totalorder %s1877_s20, 0 }
  0xf5   : > { %s310_s5 = sld [smem:[#allocation10 + %s1889_s4]] (!%p1475_p13)  ;;  %s311_s8 = sadd.s32 (!%p1475_p13), 1, %s1889_s4 }
  0xf6   : > { %309 = sbr.rel (%p1475_p13) target bundleno = 536 (0x218), region = 52  ;;  %s312_s9 = sld [smem:[#allocation10 + %s311_s8]] (!%p1475_p13) }
  0xf7   : > { %s313_s14 = sadd.s32 (!%p1475_p13), 2, %s1889_s4  ;;  %s315_s12 = sadd.s32 (!%p1475_p13), 3, %s1889_s4 }
  0xf8   : > { %s1942_s29 = sld [smem:[#allocation10 + %s313_s14]] (!%p1475_p13) }
  0xf9   : > { %s316_s20 = sld [smem:[#allocation10 + %s315_s12]] (!%p1475_p13) }
  0xfb   : > { %v317_v29 = vld [vmem:[%s1883_s30] sm:$0xff]  ;;  %v318_v30 = vld [vmem:[%s1883_s30 + $0x8] sm:$0xff]  ;;  %v319_v31 = vld [vmem:[%s1883_s30 + $0x10] sm:$0xff]  ;;  %v323_v35 = vstv %s310_s5  ;;  %vm352_vm5 = vcmask 130048  }
  0xfc   : > { %v320_v32 = vld [vmem:[%s1883_s30 + $0x18] sm:$0xff]  ;;  %v321_v33 = vld [vmem:[%s1883_s30 + $0x20] sm:$0xff]  ;;  %v322_v34 = vld [vmem:[%s1883_s30 + $0x28] sm:$0xff]  ;;  %v324_v36 = vmul.f32 %v323_v35, %v317_v29  ;;  %v325_v37 = vmul.f32 %v323_v35, %v318_v30  ;;  %v326_v38 = vmul.f32 %v323_v35, %v319_v31  ;;  %v366_v10 = vstv %s312_s9  ;;  %s373_s6 = ssub.f32 1.0, %s312_s9 }
  0xfd   : > { %v327_v39 = vmul.f32 %v323_v35, %v320_v32  ;;  %v328_v40 = vmul.f32 %v323_v35, %v321_v33  ;;  %v329_v41 = vmul.f32 %v323_v35, %v322_v34 }
  0xfe   : > { %v330_v42 = vmax.f32 %v324_v36, 0.0  ;;  %v331_v43 = vmax.f32 %v325_v37, 0.0  ;;  %v332_v44 = vmax.f32 %v326_v38, 0.0  ;;  %s407_s7 = ssub.f32 1.0, %s1942_s29 }
  0xff   : > { %v333_v45 = vmax.f32 %v327_v39, 0.0  ;;  %v334_v46 = vmax.f32 %v328_v40, 0.0  ;;  %v335_v47 = vmax.f32 %v329_v41, 0.0 }
 0x100   : > { %v336_v48 = vmin.f32 %v330_v42, 1.0  ;;  %v337_v49 = vmin.f32 %v331_v43, 1.0  ;;  %v338_v50 = vmin.f32 %v332_v44, 1.0  ;;  %v404_v44 = vstv %s1942_s29 }
 0x101   : > { %v339_v51 = vmin.f32 %v333_v45, 1.0  ;;  %v340_v52 = vmin.f32 %v334_v46, 1.0  ;;  %v341_v53 = vmin.f32 %v335_v47, 1.0  ;;  %v408_v45 = vstv %s407_s7 }
 0x102   : > { %v342_v54 = vmul.f32 0.299, %v336_v48  ;;  %v343_v55 = vmul.f32 0.299, %v337_v49  ;;  %v344_v56 = vmul.f32 0.587, %v338_v50  ;;  %v367_v11 = vmul.f32 %v366_v10, %v336_v48 }
 0x103   : > { %v345_v57 = vmul.f32 0.587, %v339_v51  ;;  %v348_v58 = vmul.f32 0.114, %v340_v52  ;;  %v349_v59 = vmul.f32 0.114, %v341_v53  ;;  %v368_v12 = vmul.f32 %v366_v10, %v337_v49 }
 0x104   : > { %v346_v60 = vadd.f32 %v344_v56, %v342_v54  ;;  %v369_v13 = vmul.f32 %v366_v10, %v338_v50  ;;  %v370_v14 = vmul.f32 %v366_v10, %v339_v51  ;;  %v371_v15 = vmul.f32 %v366_v10, %v340_v52 }
 0x105   : > { %v347_v61 = vadd.f32 %v345_v57, %v343_v55  ;;  %v372_v16 = vmul.f32 %v366_v10, %v341_v53 }
 0x106   : > { %v350_v62 = vadd.f32 %v348_v58, %v346_v60 }
 0x107   : > { %v351_v63 = vadd.f32 %v349_v59, %v347_v61 }
 0x108   : > { %v353_v0 = vsel %vm352_vm5, %v350_v62, 0.0 }
 0x109   : > { %v354_v1 = vsel %vm352_vm5, %v351_v63, 0.0 }
 0x10a   : > { %v355_v2 = vadd.f32 %v354_v1, %v353_v0 }
 0x10c   : > { %356 = vadd.xlane.f32.xlu0 %v355_v2 }
 0x17f   : > { %v357_v3 = vpop.xlane.xlu0 %356 }
 0x180   : > { %v358_v4 = vrot.slane %v357_v3, 4 }
 0x182   : > { %v359_v5 = vadd.f32 %v358_v4, %v357_v3 }
 0x184   : > { %v360_v6 = vrot.slane %v359_v5, 2 }
 0x186   : > { %v361_v7 = vadd.f32 %v360_v6, %v359_v5 }
 0x188   : > { %v362_v8 = vrot.slane %v361_v7, 1 }
 0x18a   : > { %v363_v9 = vadd.f32 %v362_v8, %v361_v7 }
 0x18c   : > { %1500 = vpush %v363_v9 }
 0x1bd   : > { %s1501_s10 = spop %1500 }
 0x1be   : > { %s365_s13 = smul.f32 0.00390625, %s1501_s10 }
 0x1c0   : > { %s374_s15 = smul.f32 %s373_s6, %s365_s13 }
 0x1c2   : > { %v375_v17 = vstv %s374_s15 }
 0x1c3   : > { %v376_v18 = vadd.f32 %v375_v17, %v367_v11  ;;  %v377_v19 = vadd.f32 %v375_v17, %v368_v12  ;;  %v378_v20 = vadd.f32 %v375_v17, %v369_v13  ;;  %v379_v21 = vadd.f32 %v375_v17, %v370_v14 }
 0x1c4   : > { %v380_v22 = vadd.f32 %v375_v17, %v371_v15  ;;  %v381_v23 = vadd.f32 %v375_v17, %v372_v16 }
 0x1c5   : > { %v382_v24 = vmax.f32 %v376_v18, 0.0  ;;  %v383_v25 = vmax.f32 %v377_v19, 0.0  ;;  %v384_v26 = vmax.f32 %v378_v20, 0.0  ;;  %v385_v27 = vmax.f32 %v379_v21, 0.0 }
 0x1c6   : > { %v386_v28 = vmax.f32 %v380_v22, 0.0  ;;  %v387_v29 = vmax.f32 %v381_v23, 0.0 }
 0x1c7   : > { %v388_v30 = vmin.f32 %v382_v24, 1.0  ;;  %v389_v31 = vmin.f32 %v383_v25, 1.0  ;;  %v390_v32 = vmin.f32 %v384_v26, 1.0  ;;  %v391_v33 = vmin.f32 %v385_v27, 1.0 }
 0x1c8   : > { %v392_v34 = vmin.f32 %v386_v28, 1.0  ;;  %v393_v35 = vmin.f32 %v387_v29, 1.0 }
 0x1c9   : > { %v394_v36 = vmul.f32 0.299, %v388_v30  ;;  %v395_v37 = vmul.f32 0.299, %v389_v31  ;;  %v396_v38 = vmul.f32 0.587, %v390_v32  ;;  %v405_v48 = vmul.f32 %v404_v44, %v388_v30 }
 0x1ca   : > { %v397_v39 = vmul.f32 0.587, %v391_v33  ;;  %v400_v41 = vmul.f32 0.114, %v392_v34  ;;  %v401_v43 = vmul.f32 0.114, %v393_v35  ;;  %v417_v50 = vmul.f32 %v404_v44, %v390_v32 }
 0x1cb   : > { %v398_v40 = vadd.f32 %v396_v38, %v394_v36  ;;  %v425_v51 = vmul.f32 %v404_v44, %v392_v34  ;;  %v406_v52 = vmul.f32 %v404_v44, %v389_v31  ;;  %v418_v54 = vmul.f32 %v404_v44, %v391_v33 }
 0x1cc   : > { %v399_v42 = vadd.f32 %v397_v39, %v395_v37  ;;  %v426_v55 = vmul.f32 %v404_v44, %v393_v35 }
 0x1cd   : > { %v402_v46 = vadd.f32 %v400_v41, %v398_v40 }
 0x1ce   : > { %v403_v47 = vadd.f32 %v401_v43, %v399_v42 }
 0x1cf   : > { %v409_v49 = vmul.f32 %v408_v45, %v402_v46 }
 0x1d0   : > { %v410_v53 = vmul.f32 %v408_v45, %v403_v47 }
 0x1d1   : > { %v411_v56 = vadd.f32 %v409_v49, %v405_v48  ;;  %v419_v57 = vadd.f32 %v417_v50, %v409_v49  ;;  %v427_v58 = vadd.f32 %v425_v51, %v409_v49 }
 0x1d2   : > { %v412_v59 = vadd.f32 %v410_v53, %v406_v52  ;;  %v420_v60 = vadd.f32 %v418_v54, %v410_v53  ;;  %v428_v61 = vadd.f32 %v426_v55, %v410_v53 }
 0x1d3   : > { %v413_v62 = vmax.f32 %v411_v56, 0.0  ;;  %v421_v63 = vmax.f32 %v419_v57, 0.0  ;;  %v429_v0 = vmax.f32 %v427_v58, 0.0  ;;  %v493_v56 = vstv %s316_s20 }
 0x1d4   : > { %v414_v1 = vmax.f32 %v412_v59, 0.0  ;;  %v422_v2 = vmax.f32 %v420_v60, 0.0  ;;  %v430_v3 = vmax.f32 %v428_v61, 0.0 }
 0x1d5   : > { %v415_v4 = vmin.f32 %v413_v62, 1.0  ;;  %v423_v5 = vmin.f32 %v421_v63, 1.0  ;;  %v431_v8 = vmin.f32 %v429_v0, 1.0 }
 0x1d6   : > { %v416_v6 = vmin.f32 %v414_v1, 1.0  ;;  %v424_v7 = vmin.f32 %v422_v2, 1.0  ;;  %v432_v11 = vmin.f32 %v430_v3, 1.0 }
 0x1d7   : > { %v433_v9 = vmax.f32 %v415_v4, %v423_v5  ;;  %v437_v10 = vmin.f32 %v415_v4, %v423_v5 }
 0x1d8   : > { %v434_v12 = vmax.f32 %v416_v6, %v424_v7  ;;  %v438_v13 = vmin.f32 %v416_v6, %v424_v7 }
 0x1d9   : > { %v1946_v14 = vmax.f32 %v433_v9, %v431_v8  ;;  %v439_v15 = vmin.f32 %v437_v10, %v431_v8 }
 0x1da   : > { %v1948_v16 = vmax.f32 %v434_v12, %v432_v11  ;;  %v440_v17 = vmin.f32 %v438_v13, %v432_v11 }
 0x1db   : > { %v1951_v18 = vsub.f32 %v1946_v14, %v439_v15  ;;  %v455_v22 = vsub.f32 %v1946_v14, %v415_v4  ;;  %v459_v23 = vsub.f32 %v1946_v14, %v423_v5  ;;  %v463_v27 = vsub.f32 %v1946_v14, %v431_v8 }
 0x1dc   : > { %v1954_v19 = vsub.f32 %v1948_v16, %v440_v17  ;;  %v456_v25 = vsub.f32 %v1948_v16, %v416_v6  ;;  %v460_v26 = vsub.f32 %v1948_v16, %v424_v7  ;;  %v464_v31 = vsub.f32 %v1948_v16, %v432_v11 }
 0x1dd   : > { %vm449_vm6 = vcmp.eq.f32.partialorder %v1951_v18, 0.0  ;;  %vm471_vm8 = vcmp.eq.f32.partialorder %v1946_v14, %v423_v5  ;;  %vm467_vm9 = vcmp.eq.f32.partialorder %v1946_v14, %v415_v4  ;;  %vm472_vm10 = vcmp.eq.f32.partialorder %v1948_v16, %v424_v7 }
 0x1de   : > { %vm450_vm7 = vcmp.eq.f32.partialorder %v1954_v19, 0.0  ;;  %v451_v20 = vsel %vm449_vm6, 1.0, %v1951_v18  ;;  %vm468_vm11 = vcmp.eq.f32.partialorder %v1948_v16, %v416_v6  ;;  %v443_v53 = vadd.f32 1e-08, %v1946_v14 }
 0x1df   : > { %v452_v21 = vsel %vm450_vm7, 1.0, %v1954_v19  ;;  %1580 = vrcp.f32 %v451_v20  ;;  %v444_v62 = vadd.f32 1e-08, %v1948_v16 }
 0x1e0   : > { %1582 = vrcp.f32 %v452_v21 }
 0x1e1   : > { %1584 = vrcp.f32 %v443_v53 }
 0x1e2   : > { %1586 = vrcp.f32 %v444_v62 }
 0x1e5   : > { %v1581_v24 = vpop.eup %1580 }
 0x1e6   : > { %v1583_v28 = vpop.eup %1582  ;;  %v457_v29 = vmul.f32 %v1581_v24, %v455_v22  ;;  %v461_v30 = vmul.f32 %v1581_v24, %v459_v23  ;;  %v465_v34 = vmul.f32 %v1581_v24, %v463_v27 }
 0x1e7   : > { %v458_v32 = vmul.f32 %v1583_v28, %v456_v25  ;;  %v462_v33 = vmul.f32 %v1583_v28, %v460_v26  ;;  %v466_v35 = vmul.f32 %v1583_v28, %v464_v31  ;;  %v1585_v3 = vpop.eup %1584 }
 0x1e8   : > { %v473_v36 = vadd.f32 2.0, %v457_v29  ;;  %v477_v37 = vadd.f32 4.0, %v461_v30  ;;  %v469_v42 = vsub.f32 %v465_v34, %v461_v30  ;;  %v447_v9 = vmul.f32 %v1585_v3, %v1951_v18  ;;  %v1587_v21 = vpop.eup %1586 }
 0x1e9   : > { %v474_v38 = vadd.f32 2.0, %v458_v32  ;;  %v478_v39 = vadd.f32 4.0, %v462_v33  ;;  %v470_v45 = vsub.f32 %v466_v35, %v462_v33  ;;  %v448_v31 = vmul.f32 %v1587_v21, %v1954_v19 }
 0x1ea   : > { %v475_v40 = vsub.f32 %v473_v36, %v465_v34  ;;  %v479_v41 = vsub.f32 %v477_v37, %v457_v29 }
 0x1eb   : > { %v476_v43 = vsub.f32 %v474_v38, %v466_v35  ;;  %v480_v44 = vsub.f32 %v478_v39, %v458_v32  ;;  %v503_v19 = vmul.f32 %v448_v31, %v1948_v16 }
 0x1ec   : > { %v481_v46 = vsel %vm471_vm8, %v475_v40, %v479_v41 }
 0x1ed   : > { %v482_v47 = vsel %vm472_vm10, %v476_v43, %v480_v44  ;;  %v483_v48 = vsel %vm467_vm9, %v469_v42, %v481_v46  ;;  %v502_v42 = vmul.f32 %v447_v9, %v1946_v14 }
 0x1ee   : > { %v484_v49 = vsel %vm468_vm11, %v470_v45, %v482_v47  ;;  %v485_v50 = vmul.f32 0.16666667, %v483_v48 }
 0x1ef   : > { %v486_v51 = vmul.f32 0.16666667, %v484_v49 }
 0x1f0   : > { %v487_v52 = vfloor.f32 %v485_v50 }
 0x1f1   : > { %v488_v54 = vfloor.f32 %v486_v51 }
 0x1f2   : > { %v489_v55 = vsub.f32 %v485_v50, %v487_v52 }
 0x1f3   : > { %v490_v57 = vsub.f32 %v486_v51, %v488_v54 }
 0x1f4   : > { %v491_v58 = vsel %vm449_vm6, 0.0, %v489_v55 }
 0x1f5   : > { %v492_v59 = vsel %vm450_vm7, 0.0, %v490_v57  ;;  %v494_v60 = vadd.f32 %v493_v56, %v491_v58 }
 0x1f6   : > { %v495_v61 = vadd.f32 %v493_v56, %v492_v59 }
 0x1f7   : > { %v496_v63 = vfloor.f32 %v494_v60 }
 0x1f8   : > { %v497_v0 = vfloor.f32 %v495_v61 }
 0x1f9   : > { %v498_v1 = vsub.f32 %v494_v60, %v496_v63 }
 0x1fa   : > { %v499_v2 = vsub.f32 %v495_v61, %v497_v0 }
 0x1fb   : > { %v500_v4 = vmul.f32 6.0, %v498_v1 }
 0x1fc   : > { %v501_v5 = vmul.f32 6.0, %v499_v2 }
 0x1fd   : > { %v504_v6 = vadd.f32 5.0, %v500_v4  ;;  %v524_v7 = vadd.f32 3.0, %v500_v4  ;;  %v544_v8 = vadd.f32 1.0, %v500_v4 }
 0x1fe   : > { %v505_v10 = vadd.f32 5.0, %v501_v5  ;;  %v525_v11 = vadd.f32 3.0, %v501_v5  ;;  %v545_v12 = vadd.f32 1.0, %v501_v5 }
 0x1ff   : > { %vm506_vm12 = vcmp.ge.f32.partialorder %v504_v6, 6.0  ;;  %v1476_v13 = vadd.f32 -6.0, %v504_v6  ;;  %vm526_vm13 = vcmp.ge.f32.partialorder %v524_v7, 6.0  ;;  %v1478_v15 = vadd.f32 -6.0, %v524_v7 }
 0x200   : > { %vm507_vm14 = vcmp.ge.f32.partialorder %v505_v10, 6.0  ;;  %v1477_v17 = vadd.f32 -6.0, %v505_v10  ;;  %vm527_vm15 = vcmp.ge.f32.partialorder %v525_v11, 6.0  ;;  %v1479_v20 = vadd.f32 -6.0, %v525_v11 }
 0x201   : > { %v510_v22 = vsel %vm506_vm12, %v1476_v13, %v504_v6  ;;  %v530_v23 = vsel %vm526_vm13, %v1478_v15, %v524_v7  ;;  %vm546_vm0 = vcmp.ge.f32.partialorder %v544_v8, 6.0  ;;  %vm547_vm1 = vcmp.ge.f32.partialorder %v545_v12, 6.0 }
 0x202   : > { %v511_v24 = vsel %vm507_vm14, %v1477_v17, %v505_v10  ;;  %v512_v25 = vsub.f32 4.0, %v510_v22  ;;  %v531_v26 = vsel %vm527_vm15, %v1479_v20, %v525_v11  ;;  %v532_v18 = vsub.f32 4.0, %v530_v23 }
 0x203   : > { %v513_v27 = vsub.f32 4.0, %v511_v24  ;;  %v533_v28 = vsub.f32 4.0, %v531_v26  ;;  %v1480_v29 = vadd.f32 -6.0, %v544_v8  ;;  %v1481_v30 = vadd.f32 -6.0, %v545_v12 }
 0x204   : > { %v514_v32 = vmin.f32 %v510_v22, %v512_v25  ;;  %v534_v33 = vmin.f32 %v530_v23, %v532_v18 }
 0x205   : > { %v515_v34 = vmin.f32 %v511_v24, %v513_v27  ;;  %v535_v35 = vmin.f32 %v531_v26, %v533_v28  ;;  %v550_v36 = vsel %vm546_vm0, %v1480_v29, %v544_v8  ;;  %v551_v37 = vsel %vm547_vm1, %v1481_v30, %v545_v12 }
 0x206   : > { %v516_v38 = vmin.f32 %v514_v32, 1.0  ;;  %v536_v39 = vmin.f32 %v534_v33, 1.0  ;;  %v552_v40 = vsub.f32 4.0, %v550_v36  ;;  %v553_v41 = vsub.f32 4.0, %v551_v37 }
 0x207   : > { %v517_v43 = vmin.f32 %v515_v34, 1.0  ;;  %v537_v44 = vmin.f32 %v535_v35, 1.0 }
 0x208   : > { %v518_v45 = vmax.f32 %v516_v38, 0.0  ;;  %v538_v46 = vmax.f32 %v536_v39, 0.0  ;;  %v554_v47 = vmin.f32 %v550_v36, %v552_v40  ;;  %v555_v48 = vmin.f32 %v551_v37, %v553_v41 }
 0x209   : > { %v519_v49 = vmax.f32 %v517_v43, 0.0  ;;  %v539_v50 = vmax.f32 %v537_v44, 0.0 }
 0x20a   : > { %v520_v51 = vmul.f32 %v518_v45, %v502_v42  ;;  %v540_v52 = vmul.f32 %v538_v46, %v502_v42  ;;  %v556_v53 = vmin.f32 %v554_v47, 1.0  ;;  %v557_v54 = vmin.f32 %v555_v48, 1.0 }
 0x20b   : > { %v521_v55 = vmul.f32 %v519_v49, %v503_v19  ;;  %v541_v56 = vmul.f32 %v539_v50, %v503_v19 }
 0x20c   : > { %v522_v57 = vsub.f32 %v1946_v14, %v520_v51  ;;  %v542_v58 = vsub.f32 %v1946_v14, %v540_v52  ;;  %v558_v59 = vmax.f32 %v556_v53, 0.0  ;;  %v559_v60 = vmax.f32 %v557_v54, 0.0 }
 0x20d   : > { %v523_v61 = vsub.f32 %v1948_v16, %v521_v55  ;;  %v543_v62 = vsub.f32 %v1948_v16, %v541_v56 }
 0x20e   : > { %v560_v63 = vmul.f32 %v558_v59, %v502_v42  ;;  %v561_v0 = vmul.f32 %v559_v60, %v503_v19  ;;  %v564_v1 = vmax.f32 %v522_v57, 0.0  ;;  %v570_v2 = vmax.f32 %v542_v58, 0.0 }
 0x20f   : > { %v565_v3 = vmax.f32 %v523_v61, 0.0  ;;  %v571_v4 = vmax.f32 %v543_v62, 0.0 }
 0x210   : > { %v562_v5 = vsub.f32 %v1946_v14, %v560_v63  ;;  %v563_v6 = vsub.f32 %v1948_v16, %v561_v0  ;;  %v566_v7 = vmin.f32 %v564_v1, 1.0  ;;  %v572_v8 = vmin.f32 %v570_v2, 1.0 }
 0x211   : > { %v567_v9 = vmin.f32 %v565_v3, 1.0  ;;  %v573_v10 = vmin.f32 %v571_v4, 1.0 }
 0x212   : > { %568 = vst.msk [vmem:[%s1883_s30] sm:$0xff] %vm352_vm5, %v566_v7  ;;  %v577_v11 = vmax.f32 %v562_v5, 0.0  ;;  %v578_v12 = vmax.f32 %v563_v6, 0.0 }
 0x213   : > { %569 = vst.msk [vmem:[%s1883_s30 + $0x8] sm:$0xff] %vm352_vm5, %v567_v9 }
 0x214   : > { %1482 = vst.msk [vmem:[%s1883_s30 + $0x10] sm:$0xff] %vm352_vm5, %v572_v8  ;;  %v579_v13 = vmin.f32 %v577_v11, 1.0  ;;  %v580_v15 = vmin.f32 %v578_v12, 1.0 }
 0x215   : > { %1483 = vst.msk [vmem:[%s1883_s30 + $0x18] sm:$0xff] %vm352_vm5, %v573_v10 }
 0x216   : > { %1484 = vst.msk [vmem:[%s1883_s30 + $0x20] sm:$0xff] %vm352_vm5, %v579_v13 }
 0x217   : > { %1485 = vst.msk [vmem:[%s1883_s30 + $0x28] sm:$0xff] %vm352_vm5, %v580_v15 }
 0x218 PF: > { %p1486_p0 = scmp.le.s32.totalorder %s1879_s23, 0 }
 0x21a   : > { %586 = sbr.rel (%p1486_p0) target bundleno = 556 (0x22c), region = 56 }
 0x21f   : > { %v587_v14 = vld [vmem:[%s1883_s30] sm:$0xff]  ;;  %v589_v16 = vld [vmem:[%s1883_s30 + $0x10] sm:$0xff]  ;;  %v588_v23 = vld [vmem:[%s1883_s30 + $0x8] sm:$0xff]  ;;  %vm603_vm2 = vcmask 130048  }
 0x220   : > { %v591_v17 = vld [vmem:[%s1883_s30 + $0x20] sm:$0xff]  ;;  %v593_v20 = vmul.f32 0.299, %v587_v14  ;;  %v595_v21 = vmul.f32 0.587, %v589_v16  ;;  %v590_v24 = vld [vmem:[%s1883_s30 + $0x18] sm:$0xff] }
 0x221   : > { %v599_v22 = vmul.f32 0.114, %v591_v17  ;;  %v592_v25 = vld [vmem:[%s1883_s30 + $0x28] sm:$0xff]  ;;  %v594_v18 = vmul.f32 0.299, %v588_v23 }
 0x222   : > { %v597_v26 = vadd.f32 %v595_v21, %v593_v20  ;;  %v596_v27 = vmul.f32 0.587, %v590_v24  ;;  %v600_v28 = vmul.f32 0.114, %v592_v25 }
 0x224   : > { %v601_v29 = vadd.f32 %v599_v22, %v597_v26  ;;  %v598_v30 = vadd.f32 %v596_v27, %v594_v18 }
 0x226   : > { %604 = vst.msk [vmem:[%s1883_s30] sm:$0xff] %vm603_vm2, %v601_v29  ;;  %v602_v31 = vadd.f32 %v600_v28, %v598_v30 }
 0x227   : > { %606 = vst.msk [vmem:[%s1883_s30 + $0x10] sm:$0xff] %vm603_vm2, %v601_v29 }
 0x228   : > { %608 = vst.msk [vmem:[%s1883_s30 + $0x20] sm:$0xff] %vm603_vm2, %v601_v29 }
 0x229   : > { %605 = vst.msk [vmem:[%s1883_s30 + $0x8] sm:$0xff] %vm603_vm2, %v602_v31 }
 0x22a   : > { %607 = vst.msk [vmem:[%s1883_s30 + $0x18] sm:$0xff] %vm603_vm2, %v602_v31 }
 0x22b   : > { %609 = vst.msk [vmem:[%s1883_s30 + $0x28] sm:$0xff] %vm603_vm2, %v602_v31 }
 0x22c PF: > { %p1487_p3 = scmp.le.s32.totalorder %s1881_s26, 0 }
 0x22d   : > { %s613_s22 = sadd.s32 (!%p1487_p3), 4, %s1889_s4  ;;  %s615_s23 = sadd.s32 (!%p1487_p3), 5, %s1889_s4 }
 0x22e   : > { %612 = sbr.rel (%p1487_p3) target bundleno = 1087 (0x43f), region = 60  ;;  %s614_s25 = sld [smem:[#allocation10 + %s613_s22]] (!%p1487_p3) }
 0x22f   : > { %s617_s5 = sadd.s32 (!%p1487_p3), 6, %s1889_s4  ;;  %s616_s26 = sld [smem:[#allocation10 + %s615_s23]] (!%p1487_p3) }
 0x230   : > { %s619_s8 = sadd.s32 (!%p1487_p3), 7, %s1889_s4  ;;  %s618_s9 = sld [smem:[#allocation10 + %s617_s5]] (!%p1487_p3) }
 0x231   : > { %s621_s6 = sadd.s32 (!%p1487_p3), 8, %s1889_s4  ;;  %s620_s10 = sld [smem:[#allocation10 + %s619_s8]] (!%p1487_p3) }
 0x232   : > { %s623_s13 = sadd.s32 (!%p1487_p3), 9, %s1889_s4  ;;  %s625_s14 = sadd.s32 (!%p1487_p3), 10, %s1889_s4 }
 0x233   : > { %v635_v32 = vld [vmem:[%s1883_s30 + $0x20] sm:$0xff]  ;;  %v2021_v33 = vld [vmem:[%s1883_s30 + $0x28] sm:$0xff]  ;;  %vm637_vm3 = vcmask 130048   ;;  %vm644_vm4 = vcmask 126980   ;;  %vm652_vm5 = vcmask 125955   ;;  %vm660_vm6 = vcmask 124930  }
 0x234   : > { %642 = vst.msk [vmem:[#allocation3 + $0x34] sm:$0xff] %vm637_vm3, %v635_v32  ;;  %vm667_vm7 = vcmask 123905   ;;  %v633_v34 = vld [vmem:[%s1883_s30 + $0x10] sm:$0xff]  ;;  %s2036_s15 = sld [smem:[#allocation10 + %s621_s6]]  ;;  %v2041_v35 = vld [vmem:[%s1883_s30 + $0x18] sm:$0xff]  ;;  %s627_s12 = sadd.s32 11, %s1889_s4  ;;  %v2054_v36 = vstv %s614_s25 }
 0x235   : > { %643 = vst.msk [vmem:[#allocation3 + $0x3c] sm:$0xff] %vm637_vm3, %v2021_v33  ;;  %s2043_s29 = sld [smem:[#allocation10 + %s623_s13]]  ;;  %s629_s20 = sadd.s32 12, %s1889_s4  ;;  %v2056_v37 = vstv %s616_s26  ;;  %v631_v19 = vld [vmem:[%s1883_s30] sm:$0xff]  ;;  %v2085_v53 = vld [vmem:[%s1883_s30 + $0x8] sm:$0xff]  ;;  %vm648_vm8 = vcmask 129030  }
 0x236   : > { %647 = vst.msk [vmem:[#allocation3 + $0x2c] sm:$0x10] %vm644_vm4, %v635_v32  ;;  %s2047_s7 = sld [smem:[#allocation10 + %s625_s14]]  ;;  %v2058_v38 = vstv %s618_s9  ;;  %vm656_vm9 = vcmask 128005   ;;  %s1724_s23 = smov 4   ;;  %vm860_vm10 = vcmask 162848  }
 0x237   : > { %655 = vst.msk [vmem:[#allocation3 + $0x2e] sm:$0x8] %vm652_vm5, %v635_v32  ;;  %s2061_s22 = sld [smem:[#allocation10 + %s627_s12]]  ;;  %v2068_v44 = vstv %s620_s10  ;;  %s1725_s25 = smov 124   ;;  %vm885_vm11 = vcmask 7168   ;;  %vm910_vm12 = vcmask 171168  }
 0x238   : > { %663 = vst.msk [vmem:[#allocation3 + $0x30] sm:$0x4] %vm660_vm6, %v635_v32  ;;  %s2066_s4 = sld [smem:[#allocation10 + %s629_s20]]  ;;  %s1726_s5 = smov 6   ;;  %vm935_vm13 = vcmask 15368   ;;  %vm960_vm14 = vcmask 179368  }
 0x239   : > { %670 = vst.msk [vmem:[#allocation3 + $0x32] sm:$0x2] %vm667_vm7, %v635_v32  ;;  %s1727_s26 = smov 126   ;;  %s1728_s8 = smov 8   ;;  %vm967_vm15 = vcmask 23568   ;;  %vm992_vm0 = vcmask 187568  }
 0x23a   : > { %666 = vst.msk [vmem:[#allocation3 + $0x42] sm:$0x10] %vm644_vm4, %v2021_v33  ;;  %v2080_v52 = vstv %s2036_s15  ;;  %s1729_s9 = smov 10   ;;  %s1730_s6 = smov 2   ;;  %vm1017_vm1 = vcmask 31768   ;;  %vm1042_vm2 = vcmask 195768  }
 0x23b   : > { %673 = vst.msk [vmem:[#allocation3 + $0x44] sm:$0x8] %vm652_vm5, %v2021_v33  ;;  %v748_v51 = vld [vmem:[#allocation3 + $0x34] sm:$0xff]  ;;  %v2091_v58 = vstv %s2043_s29  ;;  %s1731_s10 = smov 12   ;;  %s1732_s13 = smov 127  }
 0x23c   : > { %640 = vst.msk [vmem:[#allocation3 + $0x1c] sm:$0xff] %vm637_vm3, %v633_v34  ;;  %v2063_v39 = vld [vmem:[#allocation3 + $0x38] sm:$0xff]  ;;  %v2094_v60 = vstv %s2047_s7  ;;  %v755_v0 = vmul.f32 %v2080_v52, %v748_v51  ;;  %s1733_s14 = smov 125   ;;  %s1734_s15 = smov 123  }
 0x23d   : > { %641 = vst.msk [vmem:[#allocation3 + $0x24] sm:$0xff] %vm637_vm3, %v2041_v35  ;;  %v692_v40 = vld [vmem:[#allocation3 + $0x39] sm:$0xff]  ;;  %v686_v49 = vmul.f32 %v2054_v36, %v2063_v39  ;;  %v2111_v11 = vstv %s2061_s22  ;;  %s1735_s29 = smov 122   ;;  %s1736_s7 = smov 121  }
 0x23e   : > { %646 = vst.msk [vmem:[#allocation3 + $0x14] sm:$0x10] %vm644_vm4, %v633_v34  ;;  %v699_v50 = vmul.f32 %v2056_v37, %v692_v40  ;;  %v711_v55 = vld [vmem:[#allocation3 + $0x3a] sm:$0xff]  ;;  %v2114_v12 = vstv %s2066_s4  ;;  %s1737_s12 = smov 120  }
 0x23f   : > { %654 = vst.msk [vmem:[#allocation3 + $0x16] sm:$0x8] %vm652_vm5, %v633_v34  ;;  %v767_v57 = vld [vmem:[#allocation3 + $0x35] sm:$0xff]  ;;  %v718_v5 = vmul.f32 %v2058_v38, %v711_v55  ;;  %v828_v40 = vmul.f32 %v2114_v12, %v2063_v39 }
 0x240   : > { %v678_v41 = vld [vmem:[#allocation3 + $0x30] sm:$0xff]  ;;  %662 = vst.msk [vmem:[#allocation3 + $0x18] sm:$0x4] %vm660_vm6, %v633_v34  ;;  %v705_v4 = vadd.f32 %v699_v50, %v686_v49  ;;  %v774_v7 = vmul.f32 %v2091_v58, %v767_v57  ;;  %v730_v10 = vld [vmem:[#allocation3 + $0x3b] sm:$0xff] }
 0x241   : > { %v691_v42 = vld [vmem:[#allocation3 + $0x31] sm:$0xff]  ;;  %v685_v45 = vmul.f32 %v2054_v36, %v678_v41  ;;  %669 = vst.msk [vmem:[#allocation3 + $0x1a] sm:$0x2] %vm667_vm7, %v633_v34  ;;  %v737_v27 = vmul.f32 %v2068_v44, %v730_v10  ;;  %v749_v34 = vld [vmem:[#allocation3 + $0x3c] sm:$0xff] }
 0x242   : > { %v710_v43 = vld [vmem:[#allocation3 + $0x32] sm:$0xff]  ;;  %v698_v46 = vmul.f32 %v2056_v37, %v691_v42  ;;  %665 = vst.msk [vmem:[#allocation3 + $0x2a] sm:$0x10] %vm644_vm4, %v2041_v35  ;;  %v724_v18 = vadd.f32 %v718_v5, %v705_v4 }
 0x243   : > { %v717_v47 = vmul.f32 %v2058_v38, %v710_v43  ;;  %v729_v48 = vld [vmem:[#allocation3 + $0x33] sm:$0xff]  ;;  %672 = vst.msk [vmem:[#allocation3 + $0x2c] sm:$0x8] %vm652_vm5, %v2041_v35  ;;  %v746_v25 = vld [vmem:[#allocation3 + $0x1c] sm:$0xff] }
 0x244   : > { %v704_v54 = vadd.f32 %v698_v46, %v685_v45  ;;  %v736_v56 = vmul.f32 %v2068_v44, %v729_v48  ;;  %v786_v59 = vld [vmem:[#allocation3 + $0x36] sm:$0xff]  ;;  %v2096_v61 = vld [vmem:[#allocation3 + $0x20] sm:$0xff]  ;;  %638 = vst.msk [vmem:[#allocation3 + $0x4] sm:$0xff] %vm637_vm3, %v631_v19  ;;  %v753_v42 = vmul.f32 %v2080_v52, %v746_v25  ;;  %v743_v55 = vadd.f32 %v737_v27, %v724_v18 }
 0x245   : > { %v690_v62 = vld [vmem:[#allocation3 + $0x21] sm:$0xff]  ;;  %v684_v1 = vmul.f32 %v2054_v36, %v2096_v61  ;;  %639 = vst.msk [vmem:[#allocation3 + $0xc] sm:$0xff] %vm637_vm3, %v2085_v53  ;;  %v793_v8 = vmul.f32 %v2094_v60, %v786_v59  ;;  %v805_v9 = vld [vmem:[#allocation3 + $0x37] sm:$0xff] }
 0x246   : > { %v723_v63 = vadd.f32 %v717_v47, %v704_v54  ;;  %v697_v2 = vmul.f32 %v2056_v37, %v690_v62  ;;  %v709_v3 = vld [vmem:[#allocation3 + $0x22] sm:$0xff]  ;;  %645 = vst.msk [vmem:[#allocation3 - $0x4] sm:$0x10] %vm644_vm4, %v631_v19  ;;  %v812_v29 = vmul.f32 %v2111_v11, %v805_v9 }
 0x247   : > { %653 = vst.msk [vmem:[#allocation3 - $0x2] sm:$0x8] %vm652_vm5, %v631_v19  ;;  %v716_v17 = vmul.f32 %v2058_v38, %v709_v3  ;;  %v728_v26 = vld [vmem:[#allocation3 + $0x23] sm:$0xff] }
 0x248   : > { %v742_v6 = vadd.f32 %v736_v56, %v723_v63  ;;  %v676_v13 = vld [vmem:[#allocation3 + $0x18] sm:$0xff]  ;;  %v703_v14 = vadd.f32 %v697_v2, %v684_v1  ;;  %661 = vst.msk [vmem:[#allocation3] sm:$0x4] %vm660_vm6, %v631_v19  ;;  %v735_v47 = vmul.f32 %v2068_v44, %v728_v26  ;;  %v747_v51 = vld [vmem:[#allocation3 + $0x24] sm:$0xff]  ;;  %v756_v56 = vmul.f32 %v2080_v52, %v749_v34 }
 0x249   : > { %v689_v15 = vld [vmem:[#allocation3 + $0x19] sm:$0xff]  ;;  %v683_v21 = vmul.f32 %v2054_v36, %v676_v13  ;;  %668 = vst.msk [vmem:[#allocation3 + $0x2] sm:$0x2] %vm667_vm7, %v631_v19 }
 0x24a   : > { %v708_v16 = vld [vmem:[#allocation3 + $0x1a] sm:$0xff]  ;;  %v761_v20 = vadd.f32 %v755_v0, %v742_v6  ;;  %v696_v22 = vmul.f32 %v2056_v37, %v689_v15  ;;  %664 = vst.msk [vmem:[#allocation3 + $0x12] sm:$0x10] %vm644_vm4, %v2085_v53  ;;  %v722_v41 = vadd.f32 %v716_v17, %v703_v14 }
 0x24b   : > { %v715_v23 = vmul.f32 %v2058_v38, %v708_v16  ;;  %v727_v24 = vld [vmem:[#allocation3 + $0x1b] sm:$0xff]  ;;  %671 = vst.msk [vmem:[#allocation3 + $0x14] sm:$0x8] %vm652_vm5, %v2085_v53  ;;  %v744_v16 = vld [vmem:[#allocation3 + $0x4] sm:$0xff] }
 0x24c   : > { %v780_v28 = vadd.f32 %v774_v7, %v761_v20  ;;  %v702_v30 = vadd.f32 %v696_v22, %v683_v21  ;;  %v734_v31 = vmul.f32 %v2068_v44, %v727_v24  ;;  %v765_v32 = vld [vmem:[#allocation3 + $0x1d] sm:$0xff]  ;;  %v2132_v43 = vld [vmem:[#allocation3 + $0x8] sm:$0xff]  ;;  %651 = vst.msk [vmem:[#allocation3 + $0x3e] sm:$0x40] %vm648_vm8, %v2021_v33  ;;  %v741_v6 = vadd.f32 %v735_v47, %v722_v41 }
 0x24d   : > { %v688_v45 = vld [vmem:[#allocation3 + $0x9] sm:$0xff]  ;;  %v784_v49 = vld [vmem:[#allocation3 + $0x1e] sm:$0xff]  ;;  %v682_v50 = vmul.f32 %v2054_v36, %v2132_v43  ;;  %659 = vst.msk [vmem:[#allocation3 + $0x40] sm:$0x20] %vm656_vm9, %v2021_v33  ;;  %v772_v63 = vmul.f32 %v2091_v58, %v765_v32  ;;  %v754_v7 = vmul.f32 %v2080_v52, %v747_v51  ;;  %v762_v20 = vadd.f32 %v756_v56, %v743_v55 }
 0x24e   : > { %v707_v46 = vld [vmem:[#allocation3 + $0xa] sm:$0xff]  ;;  %v799_v48 = vadd.f32 %v793_v8, %v780_v28  ;;  %v721_v19 = vadd.f32 %v715_v23, %v702_v30  ;;  %v695_v39 = vmul.f32 %v2056_v37, %v688_v45  ;;  %649 = vst.msk [vmem:[#allocation3 + $0xe] sm:$0x40] %vm648_vm8, %v2085_v53  ;;  %v803_v0 = vld [vmem:[#allocation3 + $0x1f] sm:$0xff]  ;;  %v791_v2 = vmul.f32 %v2094_v60, %v784_v49 }
 0x24f   : > { %v714_v54 = vmul.f32 %v2058_v38, %v707_v46  ;;  %v726_v57 = vld [vmem:[#allocation3 + $0xb] sm:$0xff]  ;;  %650 = vst.msk [vmem:[#allocation3 + $0x26] sm:$0x40] %vm648_vm8, %v2041_v35  ;;  %v810_v23 = vmul.f32 %v2111_v11, %v803_v0  ;;  %v751_v18 = vmul.f32 %v2080_v52, %v744_v16  ;;  %v760_v45 = vadd.f32 %v754_v7, %v741_v6 }
 0x250   : > { %v818_v59 = vadd.f32 %v812_v29, %v799_v48  ;;  %v740_v62 = vadd.f32 %v734_v31, %v721_v19  ;;  %v701_v1 = vadd.f32 %v695_v39, %v682_v50  ;;  %v745_v33 = vld [vmem:[#allocation3 + $0xc] sm:$0xff]  ;;  %v674_v3 = vld [vmem:[#allocation3] sm:$0xff]  ;;  %657 = vst.msk [vmem:[#allocation3 + $0x10] sm:$0x20] %vm656_vm9, %v2085_v53  ;;  %v733_v8 = vmul.f32 %v2068_v44, %v726_v57 }
 0x251   : > { %v687_v4 = vld [vmem:[#allocation3 + $0x1] sm:$0xff]  ;;  %v681_v13 = vmul.f32 %v2054_v36, %v674_v3  ;;  %658 = vst.msk [vmem:[#allocation3 + $0x28] sm:$0x20] %vm656_vm9, %v2041_v35  ;;  %v752_v21 = vmul.f32 %v2080_v52, %v745_v33  ;;  %v826_v35 = vmul.f32 %v2114_v12, %v2096_v61 }
 0x252   : > { %v706_v5 = vld [vmem:[#allocation3 + $0x2] sm:$0xff]  ;;  %v2154_v9 = vadd.f32 %v828_v40, %v818_v59  ;;  %v759_v10 = vadd.f32 %v753_v42, %v740_v62  ;;  %v694_v15 = vmul.f32 %v2056_v37, %v687_v4  ;;  %v720_v53 = vadd.f32 %v714_v54, %v701_v1 }
 0x253   : > { %v725_v14 = vld [vmem:[#allocation3 + $0x3] sm:$0xff]  ;;  %v713_v17 = vmul.f32 %v2058_v38, %v706_v5 }
 0x254   : > { %850 = vrot.lane.b32.xlu2 %v2154_v9, %s1724_s23  ;;  %v778_v22 = vadd.f32 %v772_v63, %v759_v10  ;;  %v700_v24 = vadd.f32 %v694_v15, %v681_v13  ;;  %v732_v25 = vmul.f32 %v2068_v44, %v725_v14  ;;  %v768_v26 = vld [vmem:[#allocation3 + $0x3d] sm:$0xff]  ;;  %v763_v27 = vld [vmem:[#allocation3 + $0x5] sm:$0xff]  ;;  %v739_v31 = vadd.f32 %v733_v8, %v720_v53 }
 0x255   : > { %v775_v28 = vmul.f32 %v2091_v58, %v768_v26  ;;  %v787_v29 = vld [vmem:[#allocation3 + $0x3e] sm:$0xff]  ;;  %v782_v40 = vld [vmem:[#allocation3 + $0x6] sm:$0xff]  ;;  %v770_v51 = vmul.f32 %v2091_v58, %v763_v27 }
 0x256   : > { %v806_v30 = vld [vmem:[#allocation3 + $0x3f] sm:$0xff]  ;;  %v797_v32 = vadd.f32 %v791_v2, %v778_v22  ;;  %v719_v34 = vadd.f32 %v713_v17, %v700_v24  ;;  %v794_v41 = vmul.f32 %v2094_v60, %v787_v29  ;;  %v764_v46 = vld [vmem:[#allocation3 + $0xd] sm:$0xff]  ;;  %v758_v19 = vadd.f32 %v752_v21, %v739_v31 }
 0x257   : > { %v822_v42 = vld [vmem:[#allocation3 + $0x40] sm:$0xff]  ;;  %v781_v47 = vadd.f32 %v775_v28, %v762_v20  ;;  %v813_v48 = vmul.f32 %v2111_v11, %v806_v30  ;;  %v771_v49 = vmul.f32 %v2091_v58, %v764_v46  ;;  %v783_v56 = vld [vmem:[#allocation3 + $0xe] sm:$0xff]  ;;  %v789_v57 = vmul.f32 %v2094_v60, %v782_v40 }
 0x258   : > { %v766_v61 = vld [vmem:[#allocation3 + $0x25] sm:$0xff]  ;;  %v816_v50 = vadd.f32 %v810_v23, %v797_v32  ;;  %v738_v39 = vadd.f32 %v732_v25, %v719_v34  ;;  %v829_v62 = vmul.f32 %v2114_v12, %v822_v42  ;;  %v790_v14 = vmul.f32 %v2094_v60, %v783_v56  ;;  %v802_v17 = vld [vmem:[#allocation3 + $0xf] sm:$0xff] }
 0x259   : > { %v801_v54 = vld [vmem:[#allocation3 + $0x7] sm:$0xff]  ;;  %v773_v55 = vmul.f32 %v2091_v58, %v766_v61  ;;  %v800_v59 = vadd.f32 %v794_v41, %v781_v47  ;;  %v777_v8 = vadd.f32 %v771_v49, %v758_v19  ;;  %v824_v20 = vmul.f32 %v2114_v12, %v2132_v43  ;;  %v820_v26 = vld [vmem:[#allocation3 + $0x10] sm:$0xff] }
 0x25a   : > { %v785_v63 = vld [vmem:[#allocation3 + $0x26] sm:$0xff]  ;;  %v2177_v33 = vadd.f32 %v826_v35, %v816_v50  ;;  %v757_v2 = vadd.f32 %v751_v18, %v738_v39  ;;  %v808_v5 = vmul.f32 %v2111_v11, %v801_v54  ;;  %v809_v25 = vmul.f32 %v2111_v11, %v802_v17 }
 0x25b   : > { %v804_v0 = vld [vmem:[#allocation3 + $0x27] sm:$0xff]  ;;  %v779_v3 = vadd.f32 %v773_v55, %v760_v45  ;;  %v792_v4 = vmul.f32 %v2094_v60, %v785_v63  ;;  %v819_v6 = vadd.f32 %v813_v48, %v800_v59  ;;  %v796_v24 = vadd.f32 %v790_v14, %v777_v8 }
 0x25c   : > { %v821_v1 = vld [vmem:[#allocation3 + $0x28] sm:$0xff]  ;;  %v811_v7 = vmul.f32 %v2111_v11, %v804_v0  ;;  %846 = vrot.lane.b32.xlu1 %v2177_v33, %s1724_s23  ;;  %v776_v10 = vadd.f32 %v770_v51, %v757_v2  ;;  %v825_v18 = vmul.f32 %v2114_v12, %v820_v26 }
 0x25d   : > { %v798_v13 = vadd.f32 %v792_v4, %v779_v3  ;;  %v827_v15 = vmul.f32 %v2114_v12, %v821_v1  ;;  %v2186_v16 = vadd.f32 %v829_v62, %v819_v6  ;;  %v815_v43 = vadd.f32 %v809_v25, %v796_v24 }
 0x25e   : > { %v795_v53 = vadd.f32 %v789_v57, %v776_v10 }
 0x25f   : > { %v817_v21 = vadd.f32 %v811_v7, %v798_v13  ;;  %852 = vrot.lane.b32.xlu2 %v2186_v16, %s1724_s23  ;;  %v2204_v27 = vadd.f32 %v825_v18, %v815_v43 }
 0x260   : > { %v814_v22 = vadd.f32 %v808_v5, %v795_v53 }
 0x261   : > { %v2192_v23 = vadd.f32 %v827_v15, %v817_v21 }
 0x262   : > { %v2195_v35 = vadd.f32 %v824_v20, %v814_v22 }
 0x264   : > { %842 = vrot.lane.b32.xlu0 %v2195_v35, %s1724_s23  ;;  %848 = vrot.lane.b32.xlu1 %v2192_v23, %s1724_s23 }
 0x267   : > { %871 = vrot.lane.b32.xlu2 %v2177_v33, %s1725_s25 }
 0x26c   : > { %844 = vrot.lane.b32.xlu0 %v2204_v27, %s1724_s23  ;;  %869 = vrot.lane.b32.xlu1 %v2204_v27, %s1725_s25 }
 0x26f   : > { %877 = vrot.lane.b32.xlu2 %v2186_v16, %s1725_s25 }
 0x274   : > { %867 = vrot.lane.b32.xlu0 %v2195_v35, %s1725_s25  ;;  %875 = vrot.lane.b32.xlu1 %v2154_v9, %s1725_s25 }
 0x277   : > { %896 = vrot.lane.b32.xlu2 %v2177_v33, %s1726_s5 }
 0x27c   : > { %873 = vrot.lane.b32.xlu0 %v2192_v23, %s1725_s25  ;;  %894 = vrot.lane.b32.xlu1 %v2204_v27, %s1726_s5 }
 0x27f   : > { %902 = vrot.lane.b32.xlu2 %v2186_v16, %s1726_s5 }
 0x284   : > { %892 = vrot.lane.b32.xlu0 %v2195_v35, %s1726_s5  ;;  %900 = vrot.lane.b32.xlu1 %v2154_v9, %s1726_s5 }
 0x287   : > { %921 = vrot.lane.b32.xlu2 %v2177_v33, %s1727_s26 }
 0x28c   : > { %898 = vrot.lane.b32.xlu0 %v2192_v23, %s1726_s5  ;;  %919 = vrot.lane.b32.xlu1 %v2204_v27, %s1727_s26 }
 0x28f   : > { %927 = vrot.lane.b32.xlu2 %v2186_v16, %s1727_s26 }
 0x294   : > { %917 = vrot.lane.b32.xlu0 %v2195_v35, %s1727_s26  ;;  %925 = vrot.lane.b32.xlu1 %v2154_v9, %s1727_s26 }
 0x297   : > { %946 = vrot.lane.b32.xlu2 %v2177_v33, %s1728_s8 }
 0x29c   : > { %923 = vrot.lane.b32.xlu0 %v2192_v23, %s1727_s26  ;;  %944 = vrot.lane.b32.xlu1 %v2204_v27, %s1728_s8 }
 0x29f   : > { %952 = vrot.lane.b32.xlu2 %v2186_v16, %s1728_s8 }
 0x2a4   : > { %942 = vrot.lane.b32.xlu0 %v2195_v35, %s1728_s8  ;;  %950 = vrot.lane.b32.xlu1 %v2154_v9, %s1728_s8 }
 0x2a7   : > { %978 = vrot.lane.b32.xlu2 %v2177_v33, %s1729_s9 }
 0x2ac   : > { %948 = vrot.lane.b32.xlu0 %v2192_v23, %s1728_s8  ;;  %976 = vrot.lane.b32.xlu1 %v2204_v27, %s1729_s9 }
 0x2ae   : > { %v851_v28 = vpop.permute.xlu2 %850 }
 0x2af   : > { %984 = vrot.lane.b32.xlu2 %v2186_v16, %s1729_s9  ;;  %865 = vst.msk [vmem:[#allocation3 + $0x30] sm:$0xff] %vm860_vm10, %v851_v28 }
 0x2b4   : > { %974 = vrot.lane.b32.xlu0 %v2195_v35, %s1729_s9  ;;  %982 = vrot.lane.b32.xlu1 %v2154_v9, %s1729_s9 }
 0x2b7   : > { %1003 = vrot.lane.b32.xlu2 %v2177_v33, %s1730_s6 }
 0x2b9   : > { %v853_v29 = vpop.permute.xlu2 %852 }
 0x2ba   : > { %866 = vst.msk [vmem:[#allocation3 + $0x38] sm:$0xff] %vm860_vm10, %v853_v29 }
 0x2bc   : > { %980 = vrot.lane.b32.xlu0 %v2192_v23, %s1729_s9  ;;  %1001 = vrot.lane.b32.xlu1 %v2204_v27, %s1730_s6 }
 0x2bf   : > { %1009 = vrot.lane.b32.xlu2 %v2186_v16, %s1730_s6 }
 0x2c1   : > { %v872_v30 = vpop.permute.xlu2 %871 }
 0x2c4   : > { %999 = vrot.lane.b32.xlu0 %v2195_v35, %s1730_s6  ;;  %1007 = vrot.lane.b32.xlu1 %v2154_v9, %s1730_s6 }
 0x2c7   : > { %1028 = vrot.lane.b32.xlu2 %v2177_v33, %s1731_s10 }
 0x2c9   : > { %v878_v31 = vpop.permute.xlu2 %877 }
 0x2ca   : > { %891 = vst.msk [vmem:[#allocation3 + $0x38] sm:$0xff] %vm885_vm11, %v878_v31 }
 0x2cc   : > { %1005 = vrot.lane.b32.xlu0 %v2192_v23, %s1730_s6  ;;  %1026 = vrot.lane.b32.xlu1 %v2204_v27, %s1731_s10 }
 0x2ce   : > { %v847_v32 = vpop.permute.xlu1 %846 }
 0x2cf   : > { %863 = vst.msk [vmem:[#allocation3 + $0x18] sm:$0xff] %vm860_vm10, %v847_v32  ;;  %1034 = vrot.lane.b32.xlu2 %v2186_v16, %s1731_s10 }
 0x2d0   : > { %888 = vst.msk [vmem:[#allocation3 + $0x18] sm:$0xff] %vm885_vm11, %v872_v30 }
 0x2d1   : > { %v897_v34 = vpop.permute.xlu2 %896 }
 0x2d2   : > { %913 = vst.msk [vmem:[#allocation3 + $0x18] sm:$0xff] %vm910_vm12, %v897_v34 }
 0x2d4   : > { %1024 = vrot.lane.b32.xlu0 %v2195_v35, %s1731_s10  ;;  %1032 = vrot.lane.b32.xlu1 %v2154_v9, %s1731_s10 }
 0x2d6   : > { %v843_v40 = vpop.permute.xlu0 %842  ;;  %v849_v41 = vpop.permute.xlu1 %848 }
 0x2d7   : > { %861 = vst.msk [vmem:[#allocation3] sm:$0xff] %vm860_vm10, %v843_v40 }
 0x2d8   : > { %864 = vst.msk [vmem:[#allocation3 + $0x20] sm:$0xff] %vm860_vm10, %v849_v41 }
 0x2d9   : > { %v903_v42 = vpop.permute.xlu2 %902 }
 0x2da   : > { %916 = vst.msk [vmem:[#allocation3 + $0x38] sm:$0xff] %vm910_vm12, %v903_v42 }
 0x2dc   : > { %1030 = vrot.lane.b32.xlu0 %v2192_v23, %s1731_s10 }
 0x2de   : > { %v845_v45 = vpop.permute.xlu0 %844  ;;  %v870_v46 = vpop.permute.xlu1 %869 }
 0x2df   : > { %862 = vst.msk [vmem:[#allocation3 + $0x8] sm:$0xff] %vm860_vm10, %v845_v45 }
 0x2e0   : > { %887 = vst.msk [vmem:[#allocation3 + $0x8] sm:$0xff] %vm885_vm11, %v870_v46 }
 0x2e1   : > { %v922_v47 = vpop.permute.xlu2 %921 }
 0x2e2   : > { %938 = vst.msk [vmem:[#allocation3 + $0x18] sm:$0xff] %vm935_vm13, %v922_v47 }
 0x2e6   : > { %v868_v48 = vpop.permute.xlu0 %867  ;;  %v876_v61 = vpop.permute.xlu1 %875 }
 0x2e7   : > { %886 = vst.msk [vmem:[#allocation3] sm:$0xff] %vm885_vm11, %v868_v48 }
 0x2e8   : > { %890 = vst.msk [vmem:[#allocation3 + $0x30] sm:$0xff] %vm885_vm11, %v876_v61 }
 0x2e9   : > { %v928_v19 = vpop.permute.xlu2 %927 }
 0x2ea   : > { %941 = vst.msk [vmem:[#allocation3 + $0x38] sm:$0xff] %vm935_vm13, %v928_v19 }
 0x2ee   : > { %v874_v49 = vpop.permute.xlu0 %873  ;;  %v895_v50 = vpop.permute.xlu1 %894 }
 0x2ef   : > { %889 = vst.msk [vmem:[#allocation3 + $0x20] sm:$0xff] %vm885_vm11, %v874_v49 }
 0x2f0   : > { %912 = vst.msk [vmem:[#allocation3 + $0x8] sm:$0xff] %vm910_vm12, %v895_v50 }
 0x2f1   : > { %v947_v39 = vpop.permute.xlu2 %946 }
 0x2f2   : > { %963 = vst.msk [vmem:[#allocation3 + $0x18] sm:$0xff] %vm960_vm14, %v947_v39 }
 0x2f3   : > { %970 = vst.msk [vmem:[#allocation3 + $0x18] sm:$0xff] %vm967_vm15, %v2177_v33 }
 0x2f6   : > { %v893_v51 = vpop.permute.xlu0 %892  ;;  %v901_v54 = vpop.permute.xlu1 %900 }
 0x2f7   : > { %911 = vst.msk [vmem:[#allocation3] sm:$0xff] %vm910_vm12, %v893_v51 }
 0x2f8   : > { %915 = vst.msk [vmem:[#allocation3 + $0x30] sm:$0xff] %vm910_vm12, %v901_v54 }
 0x2f9   : > { %v953_v55 = vpop.permute.xlu2 %952 }
 0x2fa   : > { %966 = vst.msk [vmem:[#allocation3 + $0x38] sm:$0xff] %vm960_vm14, %v953_v55 }
 0x2fb   : > { %973 = vst.msk [vmem:[#allocation3 + $0x38] sm:$0xff] %vm967_vm15, %v2186_v16 }
 0x2fe   : > { %v899_v56 = vpop.permute.xlu0 %898  ;;  %v920_v57 = vpop.permute.xlu1 %919 }
 0x2ff   : > { %914 = vst.msk [vmem:[#allocation3 + $0x20] sm:$0xff] %vm910_vm12, %v899_v56 }
 0x300   : > { %937 = vst.msk [vmem:[#allocation3 + $0x8] sm:$0xff] %vm935_vm13, %v920_v57 }
 0x301   : > { %v979_v59 = vpop.permute.xlu2 %978 }
 0x302   : > { %995 = vst.msk [vmem:[#allocation3 + $0x18] sm:$0xff] %vm992_vm0, %v979_v59 }
 0x306   : > { %v918_v62 = vpop.permute.xlu0 %917  ;;  %v926_v63 = vpop.permute.xlu1 %925 }
 0x307   : > { %936 = vst.msk [vmem:[#allocation3] sm:$0xff] %vm935_vm13, %v918_v62 }
 0x308   : > { %940 = vst.msk [vmem:[#allocation3 + $0x30] sm:$0xff] %vm935_vm13, %v926_v63 }
 0x309   : > { %v985_v0 = vpop.permute.xlu2 %984 }
 0x30a   : > { %998 = vst.msk [vmem:[#allocation3 + $0x38] sm:$0xff] %vm992_vm0, %v985_v0 }
 0x30e   : > { %v924_v1 = vpop.permute.xlu0 %923  ;;  %v945_v33 = vpop.permute.xlu1 %944 }
 0x30f   : > { %939 = vst.msk [vmem:[#allocation3 + $0x20] sm:$0xff] %vm935_vm13, %v924_v1 }
 0x310   : > { %962 = vst.msk [vmem:[#allocation3 + $0x8] sm:$0xff] %vm960_vm14, %v945_v33 }
 0x311   : > { %969 = vst.msk [vmem:[#allocation3 + $0x8] sm:$0xff] %vm967_vm15, %v2204_v27  ;;  %v1004_v2 = vpop.permute.xlu2 %1003 }
 0x312   : > { %1020 = vst.msk [vmem:[#allocation3 + $0x18] sm:$0xff] %vm1017_vm1, %v1004_v2 }
 0x316   : > { %v943_v3 = vpop.permute.xlu0 %942  ;;  %v951_v4 = vpop.permute.xlu1 %950 }
 0x317   : > { %961 = vst.msk [vmem:[#allocation3] sm:$0xff] %vm960_vm14, %v943_v3 }
 0x318   : > { %968 = vst.msk [vmem:[#allocation3] sm:$0xff] %vm967_vm15, %v2195_v35 }
 0x319   : > { %965 = vst.msk [vmem:[#allocation3 + $0x30] sm:$0xff] %vm960_vm14, %v951_v4  ;;  %v1010_v5 = vpop.permute.xlu2 %1009 }
 0x31a   : > { %972 = vst.msk [vmem:[#allocation3 + $0x30] sm:$0xff] %vm967_vm15, %v2154_v9 }
 0x31b   : > { %1023 = vst.msk [vmem:[#allocation3 + $0x38] sm:$0xff] %vm1017_vm1, %v1010_v5 }
 0x31e   : > { %v949_v6 = vpop.permute.xlu0 %948  ;;  %v977_v7 = vpop.permute.xlu1 %976 }
 0x31f   : > { %964 = vst.msk [vmem:[#allocation3 + $0x20] sm:$0xff] %vm960_vm14, %v949_v6 }
 0x320   : > { %971 = vst.msk [vmem:[#allocation3 + $0x20] sm:$0xff] %vm967_vm15, %v2192_v23 }
 0x321   : > { %994 = vst.msk [vmem:[#allocation3 + $0x8] sm:$0xff] %vm992_vm0, %v977_v7  ;;  %v1029_v8 = vpop.permute.xlu2 %1028 }
 0x322   : > { %1045 = vst.msk [vmem:[#allocation3 + $0x18] sm:$0xff] %vm1042_vm2, %v1029_v8 }
 0x326   : > { %v975_v10 = vpop.permute.xlu0 %974  ;;  %v983_v13 = vpop.permute.xlu1 %982 }
 0x327   : > { %993 = vst.msk [vmem:[#allocation3] sm:$0xff] %vm992_vm0, %v975_v10 }
 0x328   : > { %997 = vst.msk [vmem:[#allocation3 + $0x30] sm:$0xff] %vm992_vm0, %v983_v13 }
 0x329   : > { %v1035_v9 = vpop.permute.xlu2 %1034  ;;  %v2310_v15 = vld [vmem:[#allocation3 + $0x18] sm:$0xff] }
 0x32a   : > { %1048 = vst.msk [vmem:[#allocation3 + $0x38] sm:$0xff] %vm1042_vm2, %v1035_v9  ;;  %v1063_v14 = vmul.f32 %v2310_v15, %v2056_v37  ;;  %v1099_v23 = vmul.f32 %v2310_v15, %v2058_v38  ;;  %v1135_v28 = vmul.f32 %v2310_v15, %v2068_v44  ;;  %v1171_v46 = vmul.f32 %v2310_v15, %v2080_v52 }
 0x32b   : > { %v1207_v49 = vmul.f32 %v2310_v15, %v2091_v58  ;;  %v1243_v55 = vmul.f32 %v2310_v15, %v2094_v60  ;;  %v1057_v59 = vmul.f32 %v2310_v15, %v2054_v36  ;;  %v1279_v33 = vmul.f32 %v2310_v15, %v2111_v11 }
 0x32c   : > { %1077 = vrot.lane.b32.xlu2 %v1063_v14, %s1732_s13  ;;  %v1315_v9 = vmul.f32 %v2310_v15, %v2114_v12 }
 0x32e   : > { %v981_v16 = vpop.permute.xlu0 %980  ;;  %v1002_v17 = vpop.permute.xlu1 %1001 }
 0x32f   : > { %996 = vst.msk [vmem:[#allocation3 + $0x20] sm:$0xff] %vm992_vm0, %v981_v16 }
 0x330   : > { %1019 = vst.msk [vmem:[#allocation3 + $0x8] sm:$0xff] %vm1017_vm1, %v1002_v17 }
 0x331   : > { %v2318_v53 = vld [vmem:[#allocation3 + $0x38] sm:$0xff] }
 0x332   : > { %v1066_v20 = vmul.f32 %v2318_v53, %v2056_v37  ;;  %v1102_v26 = vmul.f32 %v2318_v53, %v2058_v38  ;;  %v1138_v40 = vmul.f32 %v2318_v53, %v2068_v44  ;;  %v1060_v2 = vmul.f32 %v2318_v53, %v2054_v36 }
 0x333   : > { %v1282_v6 = vmul.f32 %v2318_v53, %v2111_v11 }
 0x334   : > { %1083 = vrot.lane.b32.xlu2 %v1066_v20, %s1732_s13  ;;  %v1318_v20 = vmul.f32 %v2318_v53, %v2114_v12 }
 0x336   : > { %v1000_v21 = vpop.permute.xlu0 %999  ;;  %v1008_v22 = vpop.permute.xlu1 %1007 }
 0x337   : > { %1018 = vst.msk [vmem:[#allocation3] sm:$0xff] %vm1017_vm1, %v1000_v21 }
 0x338   : > { %1022 = vst.msk [vmem:[#allocation3 + $0x30] sm:$0xff] %vm1017_vm1, %v1008_v22 }
 0x33c   : > { %1113 = vrot.lane.b32.xlu2 %v1099_v23, %s1727_s26 }
 0x33e   : > { %v1006_v24 = vpop.permute.xlu0 %1005  ;;  %v1027_v25 = vpop.permute.xlu1 %1026 }
 0x33f   : > { %1021 = vst.msk [vmem:[#allocation3 + $0x20] sm:$0xff] %vm1017_vm1, %v1006_v24 }
 0x340   : > { %1044 = vst.msk [vmem:[#allocation3 + $0x8] sm:$0xff] %vm1042_vm2, %v1027_v25 }
 0x344   : > { %1119 = vrot.lane.b32.xlu2 %v1102_v26, %s1727_s26 }
 0x346   : > { %v1025_v35 = vpop.permute.xlu0 %1024  ;;  %v1033_v43 = vpop.permute.xlu1 %1032 }
 0x347   : > { %1043 = vst.msk [vmem:[#allocation3] sm:$0xff] %vm1042_vm2, %v1025_v35  ;;  %v2334_v18 = vld [vmem:[#allocation3 + $0x8] sm:$0xff] }
 0x348   : > { %1047 = vst.msk [vmem:[#allocation3 + $0x30] sm:$0xff] %vm1042_vm2, %v1033_v43  ;;  %v1062_v27 = vmul.f32 %v2334_v18, %v2056_v37  ;;  %v1098_v45 = vmul.f32 %v2334_v18, %v2058_v38  ;;  %v1134_v19 = vmul.f32 %v2334_v18, %v2068_v44  ;;  %v1170_v54 = vmul.f32 %v2334_v18, %v2080_v52 }
 0x349   : > { %v1206_v1 = vmul.f32 %v2334_v18, %v2091_v58  ;;  %v1242_v13 = vmul.f32 %v2334_v18, %v2094_v60  ;;  %v1278_v23 = vmul.f32 %v2334_v18, %v2111_v11  ;;  %v1314_v43 = vmul.f32 %v2334_v18, %v2114_v12 }
 0x34a   : > { %1075 = vrot.lane.b32.xlu1 %v1062_v27, %s1732_s13  ;;  %v1056_v27 = vmul.f32 %v2334_v18, %v2054_v36 }
 0x34c   : > { %1149 = vrot.lane.b32.xlu2 %v1135_v28, %s1733_s14 }
 0x34e   : > { %v1031_v29 = vpop.permute.xlu0 %1030  ;;  %v2343_v30 = vld [vmem:[#allocation3] sm:$0xff] }
 0x34f   : > { %1046 = vst.msk [vmem:[#allocation3 + $0x20] sm:$0xff] %vm1042_vm2, %v1031_v29  ;;  %v1061_v31 = vmul.f32 %v2343_v30, %v2056_v37  ;;  %v2348_v32 = vld [vmem:[#allocation3 + $0x30] sm:$0xff]  ;;  %v1097_v47 = vmul.f32 %v2343_v30, %v2058_v38  ;;  %v1133_v50 = vmul.f32 %v2343_v30, %v2068_v44  ;;  %v1169_v56 = vmul.f32 %v2343_v30, %v2080_v52 }
 0x350   : > { %v1065_v34 = vmul.f32 %v2348_v32, %v2056_v37  ;;  %v1101_v48 = vmul.f32 %v2348_v32, %v2058_v38  ;;  %v1137_v39 = vmul.f32 %v2348_v32, %v2068_v44  ;;  %v1173_v57 = vmul.f32 %v2348_v32, %v2080_v52 }
 0x351   : > { %1073 = vrot.lane.b32.xlu0 %v1061_v31, %s1732_s13  ;;  %v1209_v5 = vmul.f32 %v2348_v32, %v2091_v58  ;;  %v1241_v16 = vmul.f32 %v2343_v30, %v2094_v60  ;;  %v1277_v25 = vmul.f32 %v2343_v30, %v2111_v11  ;;  %v1059_v18 = vmul.f32 %v2348_v32, %v2054_v36 }
 0x352   : > { %1081 = vrot.lane.b32.xlu1 %v1065_v34, %s1732_s13  ;;  %v1313_v34 = vmul.f32 %v2343_v30, %v2114_v12 }
 0x354   : > { %1155 = vrot.lane.b32.xlu2 %v1138_v40, %s1733_s14  ;;  %v1317_v40 = vmul.f32 %v2348_v32, %v2114_v12 }
 0x356   : > { %v2357_v41 = vld [vmem:[#allocation3 + $0x20] sm:$0xff] }
 0x357   : > { %v1064_v42 = vmul.f32 %v2357_v41, %v2056_v37  ;;  %v1174_v37 = vmul.f32 %v2318_v53, %v2080_v52  ;;  %v1100_v61 = vmul.f32 %v2357_v41, %v2058_v38  ;;  %v1210_v38 = vmul.f32 %v2318_v53, %v2091_v58 }
 0x358   : > { %v1136_v51 = vmul.f32 %v2357_v41, %v2068_v44  ;;  %v1246_v44 = vmul.f32 %v2318_v53, %v2094_v60  ;;  %v1172_v63 = vmul.f32 %v2357_v41, %v2080_v52  ;;  %v1205_v52 = vmul.f32 %v2343_v30, %v2091_v58 }
 0x359   : > { %1079 = vrot.lane.b32.xlu0 %v1064_v42, %s1732_s13  ;;  %v1208_v8 = vmul.f32 %v2357_v41, %v2091_v58  ;;  %v1245_v58 = vmul.f32 %v2348_v32, %v2094_v60  ;;  %v1244_v21 = vmul.f32 %v2357_v41, %v2094_v60  ;;  %v1281_v53 = vmul.f32 %v2348_v32, %v2111_v11 }
 0x35a   : > { %1111 = vrot.lane.b32.xlu1 %v1098_v45, %s1727_s26  ;;  %v1280_v35 = vmul.f32 %v2357_v41, %v2111_v11  ;;  %v1055_v11 = vmul.f32 %v2343_v30, %v2054_v36 }
 0x35c   : > { %1185 = vrot.lane.b32.xlu2 %v1171_v46, %s1725_s25 }
 0x361   : > { %1109 = vrot.lane.b32.xlu0 %v1097_v47, %s1727_s26 }
 0x362   : > { %1117 = vrot.lane.b32.xlu1 %v1101_v48, %s1727_s26 }
 0x364   : > { %1191 = vrot.lane.b32.xlu2 %v1174_v37, %s1725_s25  ;;  %v1316_v37 = vmul.f32 %v2357_v41, %v2114_v12 }
 0x369   : > { %1115 = vrot.lane.b32.xlu0 %v1100_v61, %s1727_s26  ;;  %v1058_v61 = vmul.f32 %v2357_v41, %v2054_v36 }
 0x36a   : > { %1147 = vrot.lane.b32.xlu1 %v1134_v19, %s1733_s14 }
 0x36c   : > { %1221 = vrot.lane.b32.xlu2 %v1207_v49, %s1734_s15 }
 0x371   : > { %1145 = vrot.lane.b32.xlu0 %v1133_v50, %s1733_s14 }
 0x372   : > { %1153 = vrot.lane.b32.xlu1 %v1137_v39, %s1733_s14 }
 0x374   : > { %1227 = vrot.lane.b32.xlu2 %v1210_v38, %s1734_s15 }
 0x379   : > { %1151 = vrot.lane.b32.xlu0 %v1136_v51, %s1733_s14 }
 0x37a   : > { %1183 = vrot.lane.b32.xlu1 %v1170_v54, %s1725_s25 }
 0x37c   : > { %1257 = vrot.lane.b32.xlu2 %v1243_v55, %s1735_s29 }
 0x381   : > { %1181 = vrot.lane.b32.xlu0 %v1169_v56, %s1725_s25 }
 0x382   : > { %1189 = vrot.lane.b32.xlu1 %v1173_v57, %s1725_s25 }
 0x384   : > { %1263 = vrot.lane.b32.xlu2 %v1246_v44, %s1735_s29 }
 0x386   : > { %v1078_v62 = vpop.permute.xlu2 %1077 }
 0x387   : > { %v1093_v0 = vadd.f32 %v1078_v62, %v1057_v59 }
 0x389   : > { %1187 = vrot.lane.b32.xlu0 %v1172_v63, %s1725_s25 }
 0x38a   : > { %1219 = vrot.lane.b32.xlu1 %v1206_v1, %s1734_s15 }
 0x38c   : > { %1293 = vrot.lane.b32.xlu2 %v1279_v33, %s1736_s7 }
 0x38e   : > { %v1084_v3 = vpop.permute.xlu2 %1083 }
 0x38f   : > { %v1096_v4 = vadd.f32 %v1084_v3, %v1060_v2 }
 0x391   : > { %1217 = vrot.lane.b32.xlu0 %v1205_v52, %s1734_s15 }
 0x392   : > { %1225 = vrot.lane.b32.xlu1 %v1209_v5, %s1734_s15 }
 0x394   : > { %1299 = vrot.lane.b32.xlu2 %v1282_v6, %s1736_s7 }
 0x396   : > { %v1114_v7 = vpop.permute.xlu2 %1113 }
 0x397   : > { %v1129_v10 = vadd.f32 %v1114_v7, %v1093_v0 }
 0x399   : > { %1223 = vrot.lane.b32.xlu0 %v1208_v8, %s1734_s15 }
 0x39a   : > { %1255 = vrot.lane.b32.xlu1 %v1242_v13, %s1735_s29 }
 0x39c   : > { %1329 = vrot.lane.b32.xlu2 %v1315_v9, %s1737_s12 }
 0x39e   : > { %v1120_v14 = vpop.permute.xlu2 %1119 }
 0x39f   : > { %v1132_v17 = vadd.f32 %v1120_v14, %v1096_v4 }
 0x3a1   : > { %1253 = vrot.lane.b32.xlu0 %v1241_v16, %s1735_s29 }
 0x3a2   : > { %1261 = vrot.lane.b32.xlu1 %v1245_v58, %s1735_s29 }
 0x3a4   : > { %1335 = vrot.lane.b32.xlu2 %v1318_v20, %s1737_s12 }
 0x3a6   : > { %v1150_v15 = vpop.permute.xlu2 %1149 }
 0x3a7   : > { %v1165_v22 = vadd.f32 %v1150_v15, %v1129_v10 }
 0x3a9   : > { %1259 = vrot.lane.b32.xlu0 %v1244_v21, %s1735_s29 }
 0x3aa   : > { %1291 = vrot.lane.b32.xlu1 %v1278_v23, %s1736_s7 }
 0x3ae   : > { %v1156_v24 = vpop.permute.xlu2 %1155 }
 0x3af   : > { %v1168_v26 = vadd.f32 %v1156_v24, %v1132_v17 }
 0x3b1   : > { %1289 = vrot.lane.b32.xlu0 %v1277_v25, %s1736_s7 }
 0x3b2   : > { %1297 = vrot.lane.b32.xlu1 %v1281_v53, %s1736_s7 }
 0x3b6   : > { %v1186_v60 = vpop.permute.xlu2 %1185 }
 0x3b7   : > { %v1201_v52 = vadd.f32 %v1186_v60, %v1165_v22 }
 0x3b9   : > { %1295 = vrot.lane.b32.xlu0 %v1280_v35, %s1736_s7 }
 0x3ba   : > { %1327 = vrot.lane.b32.xlu1 %v1314_v43, %s1737_s12 }
 0x3bc   : > { %v1076_v28 = vpop.permute.xlu1 %1075 }
 0x3bd   : > { %v1092_v29 = vadd.f32 %v1076_v28, %v1056_v27 }
 0x3be   : > { %v1192_v31 = vpop.permute.xlu2 %1191 }
 0x3bf   : > { %v1204_v13 = vadd.f32 %v1192_v31, %v1168_v26 }
 0x3c1   : > { %1325 = vrot.lane.b32.xlu0 %v1313_v34, %s1737_s12 }
 0x3c2   : > { %1333 = vrot.lane.b32.xlu1 %v1317_v40, %s1737_s12 }
 0x3c3   : > { %v1074_v42 = vpop.permute.xlu0 %1073 }
 0x3c4   : > { %v1091_v45 = vadd.f32 %v1074_v42, %v1055_v11  ;;  %v1082_v46 = vpop.permute.xlu1 %1081 }
 0x3c5   : > { %v1095_v47 = vadd.f32 %v1082_v46, %v1059_v18 }
 0x3c6   : > { %v1222_v48 = vpop.permute.xlu2 %1221 }
 0x3c7   : > { %v1237_v4 = vadd.f32 %v1222_v48, %v1201_v52 }
 0x3c9   : > { %1331 = vrot.lane.b32.xlu0 %v1316_v37, %s1737_s12 }
 0x3cb   : > { %v1080_v19 = vpop.permute.xlu0 %1079 }
 0x3cc   : > { %v1094_v30 = vadd.f32 %v1080_v19, %v1058_v61  ;;  %v1112_v49 = vpop.permute.xlu1 %1111 }
 0x3cd   : > { %v1128_v50 = vadd.f32 %v1112_v49, %v1092_v29 }
 0x3ce   : > { %v1228_v39 = vpop.permute.xlu2 %1227 }
 0x3cf   : > { %v1240_v14 = vadd.f32 %v1228_v39, %v1204_v13 }
 0x3d3   : > { %v1110_v38 = vpop.permute.xlu0 %1109 }
 0x3d4   : > { %v1127_v51 = vadd.f32 %v1110_v38, %v1091_v45  ;;  %v1118_v32 = vpop.permute.xlu1 %1117 }
 0x3d5   : > { %v1131_v54 = vadd.f32 %v1118_v32, %v1095_v47 }
 0x3d6   : > { %v1258_v55 = vpop.permute.xlu2 %1257 }
 0x3d7   : > { %v1273_v5 = vadd.f32 %v1258_v55, %v1237_v4 }
 0x3db   : > { %v1116_v56 = vpop.permute.xlu0 %1115 }
 0x3dc   : > { %v1130_v57 = vadd.f32 %v1116_v56, %v1094_v30  ;;  %v1148_v44 = vpop.permute.xlu1 %1147 }
 0x3dd   : > { %v1164_v59 = vadd.f32 %v1148_v44, %v1128_v50 }
 0x3de   : > { %v1264_v12 = vpop.permute.xlu2 %1263 }
 0x3df   : > { %v1276_v16 = vadd.f32 %v1264_v12, %v1240_v14 }
 0x3e3   : > { %v1146_v62 = vpop.permute.xlu0 %1145 }
 0x3e4   : > { %v1163_v63 = vadd.f32 %v1146_v62, %v1127_v51  ;;  %v1154_v0 = vpop.permute.xlu1 %1153 }
 0x3e5   : > { %v1167_v1 = vadd.f32 %v1154_v0, %v1131_v54 }
 0x3e6   : > { %v1294_v36 = vpop.permute.xlu2 %1293 }
 0x3e7   : > { %v1309_v8 = vadd.f32 %v1294_v36, %v1273_v5 }
 0x3eb   : > { %v1152_v41 = vpop.permute.xlu0 %1151 }
 0x3ec   : > { %v1166_v33 = vadd.f32 %v1152_v41, %v1130_v57  ;;  %v1184_v2 = vpop.permute.xlu1 %1183 }
 0x3ed   : > { %v1200_v28 = vadd.f32 %v1184_v2, %v1164_v59 }
 0x3ee   : > { %v1300_v3 = vpop.permute.xlu2 %1299 }
 0x3ef   : > { %v1312_v20 = vadd.f32 %v1300_v3, %v1276_v16 }
 0x3f3   : > { %v1182_v6 = vpop.permute.xlu0 %1181 }
 0x3f4   : > { %v1190_v7 = vpop.permute.xlu1 %1189  ;;  %v1199_v11 = vadd.f32 %v1182_v6, %v1163_v63 }
 0x3f5   : > { %v1203_v18 = vadd.f32 %v1190_v7, %v1167_v1 }
 0x3f6   : > { %v1330_v10 = vpop.permute.xlu2 %1329 }
 0x3f7   : > { %v1345_v9 = vadd.f32 %v1330_v10, %v1309_v8 }
 0x3f9   : > { %1351 = vst.msk [vmem:[%s1883_s30 + $0x10] sm:$0xff] %vm637_vm3, %v1345_v9 }
 0x3fb   : > { %v1188_v17 = vpop.permute.xlu0 %1187 }
 0x3fc   : > { %v1220_v58 = vpop.permute.xlu1 %1219  ;;  %v1202_v49 = vadd.f32 %v1188_v17, %v1166_v33 }
 0x3fd   : > { %v1236_v29 = vadd.f32 %v1220_v58, %v1200_v28 }
 0x3fe   : > { %v1336_v15 = vpop.permute.xlu2 %1335 }
 0x3ff   : > { %v1348_v21 = vadd.f32 %v1336_v15, %v1312_v20 }
 0x401   : > { %1354 = vst.msk [vmem:[%s1883_s30 + $0x28] sm:$0xff] %vm637_vm3, %v1348_v21 }
 0x403   : > { %v1218_v22 = vpop.permute.xlu0 %1217 }
 0x404   : > { %v1226_v23 = vpop.permute.xlu1 %1225  ;;  %v1235_v46 = vadd.f32 %v1218_v22, %v1199_v11 }
 0x405   : > { %v1239_v47 = vadd.f32 %v1226_v23, %v1203_v18 }
 0x40b   : > { %v1224_v24 = vpop.permute.xlu0 %1223 }
 0x40c   : > { %v1256_v25 = vpop.permute.xlu1 %1255  ;;  %v1238_v51 = vadd.f32 %v1224_v24, %v1202_v49 }
 0x40d   : > { %v1272_v31 = vadd.f32 %v1256_v25, %v1236_v29 }
 0x413   : > { %v1254_v53 = vpop.permute.xlu0 %1253 }
 0x414   : > { %v1262_v60 = vpop.permute.xlu1 %1261  ;;  %v1271_v48 = vadd.f32 %v1254_v53, %v1235_v46 }
 0x415   : > { %v1275_v37 = vadd.f32 %v1262_v60, %v1239_v47 }
 0x41b   : > { %v1260_v26 = vpop.permute.xlu0 %1259 }
 0x41c   : > { %v1292_v35 = vpop.permute.xlu1 %1291  ;;  %v1274_v32 = vadd.f32 %v1260_v26, %v1238_v51 }
 0x41d   : > { %v1308_v34 = vadd.f32 %v1292_v35, %v1272_v31 }
 0x423   : > { %v1290_v43 = vpop.permute.xlu0 %1289 }
 0x424   : > { %v1298_v27 = vpop.permute.xlu1 %1297  ;;  %v1307_v61 = vadd.f32 %v1290_v43, %v1271_v48 }
 0x425   : > { %v1311_v19 = vadd.f32 %v1298_v27, %v1275_v37 }
 0x42b   : > { %v1296_v40 = vpop.permute.xlu0 %1295 }
 0x42c   : > { %v1328_v42 = vpop.permute.xlu1 %1327  ;;  %v1310_v54 = vadd.f32 %v1296_v40, %v1274_v32 }
 0x42d   : > { %v1344_v45 = vadd.f32 %v1328_v42, %v1308_v34 }
 0x42f   : > { %1350 = vst.msk [vmem:[%s1883_s30 + $0x8] sm:$0xff] %vm637_vm3, %v1344_v45 }
 0x433   : > { %v1326_v30 = vpop.permute.xlu0 %1325 }
 0x434   : > { %v1343_v50 = vadd.f32 %v1326_v30, %v1307_v61  ;;  %v1334_v39 = vpop.permute.xlu1 %1333 }
 0x435   : > { %v1347_v38 = vadd.f32 %v1334_v39, %v1311_v19 }
 0x436   : > { %1349 = vst.msk [vmem:[%s1883_s30] sm:$0xff] %vm637_vm3, %v1343_v50 }
 0x437   : > { %1353 = vst.msk [vmem:[%s1883_s30 + $0x20] sm:$0xff] %vm637_vm3, %v1347_v38 }
 0x43b   : > { %v1332_v55 = vpop.permute.xlu0 %1331 }
 0x43c   : > { %v1346_v56 = vadd.f32 %v1332_v55, %v1310_v54 }
 0x43e   : > { %1352 = vst.msk [vmem:[%s1883_s30 + $0x18] sm:$0xff] %vm637_vm3, %v1346_v56 }
 0x43f PF: > { %s1502_s20 = smul.u32 48, %s1784_s0  ;;  %s1368_s22 = sshll.u32 %s1883_s30, 4  ;;  %s1369_s22 = int_to_ptr.vmem [resolvable:$true] %s1368_s22 }
 0x440   : > { %s1356_s26 = scalar_lea.sflag [#allocation8], %s1860_s11  ;;  %s1665_s0 = scalar_lea.hbm %s2537_s3, 96 }
 0x441   : > { %s1367_s25 = scalar_lea.hbm %s2537_s3, %s1502_s20 }
 0x442   : > { %s1370_s5 = sshll.u32 %s1367_s25, 4  ;;  %s1371_s5 = int_to_ptr.hbm [resolvable:$true] %s1370_s5 }
 0x443   : > { %s1659_s8 = sshra.s32 %s1371_s5, 4  ;;  %s1660_s8 = int_to_ptr.hbm [resolvable:$true] %s1659_s8 }
 0x444   : > { %s1661_s9 = scalar_lea.hbm %s1660_s8, 48  ;;  %p1666_p10 = scmp.lt.s32.totalorder %s1660_s8, %s2537_s3 }
 0x445   : > { %p1662_p5 = scmp.ne.s32.totalorder %s1660_s8, %s1661_s9  ;;  %p1667_p1 = scmp.lt.s32.totalorder %s1665_s0, %s1661_s9 }
 0x447   : > { %p1663_p8 = pnand %p1662_p5, %p1815_p11  ;;  %p1668_p2 = por %p1667_p1, %p1666_p10 }
 0x449   : > { %p1664_p9 = pneg %p1663_p8 }
 0x44b   : > { %p1669_p7 = pnand %p1668_p2, %p1664_p9 }
 0x44d   : > { %1672 = shalt.err (!%p1669_p7)
}
 0x44e   : > { %s1738_s11 = smov 128   ;;  %s1739_s14 = smov 8  }
 0x44f   : > { %1509 = dma.vmem_to_hbm [thread:$0]  (%p1815_p11), %s1369_s22, 768, %s1371_s5, %s1356_s26, %s1738_s11, %s1738_s11, %s1739_s14  }
 0x450 PF: > { %s1385_s15 = sand.u32 1, %s1705_s16   ;;  %p2544_p6 = scmp.ge.s32.totalorder %s1717_s19, 2 }
 0x451   : > { %s1386_s29 = scalar_lea.sflag [#allocation8], %s1385_s15 }
 0x452   : > { %p1520_p4 = pnand %p2544_p6, %p1819_p12 }
 0x454   : > { %p1521_p13 = pneg %p1520_p4 }
 0x456   : > { %1700 = dma.done.wait (%p1521_p13), %s1386_s29, 768  }
 0x457   : > { %1702 = vsyncadd (%p1521_p13), %s1386_s29, 4294966528  ;;  %p25_p0 = scmp.ge.s32.totalorder %s1788_s21, 4   ;;  %s2545_s16 = smov %s1709_s17 }
 0x458   : > { %s2546_s17 = smov %s1713_s18  ;;  %s2547_s18 = smov %s1800_s24 }
 0x459   : > { %s2548_s19 = smov %s1788_s21  ;;  %27 = sbr.rel (!%p25_p0) target bundleno = 12 (0xc), region = 104 }
 0x45e   :  { %1392 = vsyncpa [#allocation7], 1 }
 0x45f   :  { %1394 = vsyncpa [#allocation7 + $0x1], 1 }
 0x460   :  { %1395 = vsyncpa [#allocation8], 1 }
 0x461   :  { %1397 = vsyncpa [#allocation8 + $0x1], 1 }
 0x462   :  { %1398 = vsyncpa [#allocation9], 1 }
 0x463   :  { %1400 = vsyncpa [#allocation9 + $0x1], 1 }

</bundles_post_ra>
